<compile_context>
chip_gen: v5e
topology: v5e:2x2
jax: 0.10.0
libtpu: 0.0.40
codegen_flags: <defaults>
</compile_context>

<pallas_src>
import functools

import jax
import jax.numpy as jnp
import numpy as np
from jax.experimental import pallas as pl
from jax.experimental.pallas import tpu as pltpu


# ------------------------------ fused kernel ------------------------------- #

def _fused_kernel(x_ref, w1_ref, b1_ref, w2_ref, b2_ref, o_ref, xscr, yscr, *,
                  nb, c1, o1, o2, k, s, pad, H, W, h_out, w_out, h_per, Wp):
    """Fused SpatialSepConvSF for `nb` batch elements per grid step.

    x_ref : (nb, c1, H, W)              VMEM
    w1_ref: (c1*k*o1,)                  SMEM  (BN1 scale folded, layout (c,kh,o))
    b1_ref: (o1,)                       SMEM
    w2_ref: (o1*k*o2,)                  SMEM  (BN2 scale folded, layout (g,kw,j))
    b2_ref: (o1*o2,)                    SMEM
    o_ref : (nb, o1*o2, h_out, w_out)   VMEM  (NCHW, channel-shuffled)
    xscr  : (c1*s, h_per, W)            VMEM  (H-padded input, deinterleaved by
                                               row parity: [c*s+r, i] = pad row r+i*s)
    yscr  : (o1, Wp, h_out)             VMEM  (transposed, W-padded stage-1 out)
    """
    c2 = o1 * o2

    # -------- per grid step: zero ONLY the padding rows/cols of the scratch --
    # The valid regions are fully rewritten for every batch element below and
    # the pad regions are never written, so once per step is sufficient.
    for r in range(s):
        i_lo = max(0, (pad - r + s - 1) // s)            # first valid deint. row
        i_hi = min(h_per - 1, (pad + H - 1 - r) // s)    # last valid deint. row
        for c in range(c1):
            row = c * s + r
            if i_lo > 0:
                xscr[row, 0:i_lo, :] = jnp.zeros((i_lo, W), jnp.float32)
            if i_hi < h_per - 1:
                xscr[row, i_hi + 1:h_per, :] = jnp.zeros(
                    (h_per - 1 - i_hi, W), jnp.float32)
    if pad > 0:
        yscr[:, 0:pad, :] = jnp.zeros((o1, pad, h_out), jnp.float32)
        yscr[:, pad + W:Wp, :] = jnp.zeros((o1, Wp - pad - W, h_out), jnp.float32)

    for b in range(nb):
        # ---- fused H-pad + stride-s deinterleave of the input ----------------
        # (the only strided accesses left in stage 1: c1*s of them, and the
        #  copy doubles as the zero-pad staging)
        for c in range(c1):
            for r in range(s):
                i_lo = max(0, (pad - r + s - 1) // s)
                i_hi = min(h_per - 1, (pad + H - 1 - r) // s)
                cnt = i_hi - i_lo + 1
                src = r + i_lo * s - pad
                xs = x_ref[pl.ds(b, 1), pl.ds(c, 1),
                           pl.ds(src, cnt, stride=s), pl.ds(0, W)]
                xscr[c * s + r, i_lo:i_lo + cnt, :] = xs[0, 0]

        # ---- stage 1: (k,1) conv, stride (s,1) + folded BN1 ------------------
        # Every tap is a contiguous (h_out, W) read, reused by all o1 channels.
        accs = [jnp.full((h_out, W), b1_ref[o], dtype=jnp.float32)
                for o in range(o1)]
        for c in range(c1):
            for kh in range(k):
                xs = xscr[c * s + kh % s, kh // s:kh // s + h_out, :]
                base = (c * k + kh) * o1
                for o in range(o1):
                    accs[o] = accs[o] + xs * w1_ref[base + o]

        # ---- handoff: H<->W transpose + W-pad, ONE wide scratch store --------
        # (per-plane minor-dim transposes on the XLU, combined into one store)
        yscr[:, pad:pad + W, :] = jnp.stack([a.T for a in accs], axis=0)

        # ---- stage 2: grouped (1,k) conv, stride (1,s) + BN2 + ChannelShuffle -
        planes = [None] * c2                       # (h_out, w_out), shuffled order
        for g in range(o1):                        # group == stage-1 channel
            acc2 = [jnp.full((w_out, h_out), b2_ref[g * o2 + j], dtype=jnp.float32)
                    for j in range(o2)]
            for kw in range(k):
                ys = yscr[pl.ds(g, 1), pl.ds(kw, w_out, stride=s),
                          pl.ds(0, h_out)][0]      # (w_out, h_out)
                base = (g * k + kw) * o2
                for j in range(o2):
                    acc2[j] = acc2[j] + ys * w2_ref[base + j]
            for j in range(o2):
                # ChannelShuffle(groups=o1): out[:, j*o1 + g] = conv2[:, g*o2 + j]
                planes[j * o1 + g] = acc2[j].T
        # single NCHW store for this batch element
        o_ref[b] = jnp.stack(planes, axis=0)


# --------------------------------- wrapper ---------------------------------- #

def spatial_sep_conv_sf(x, p, *, k, s, o1, o2, eps=1e-5, grid_steps=None):
    """x: (N, c1, H, W) float32, NCHW. Returns (N, o1*o2, H_out, W_out)."""
    N, c1, H, W = x.shape
    pad = k // 2
    h_out = (H + 2 * pad - k) // s + 1
    w_out = (W + 2 * pad - k) // s + 1
    c2 = o1 * o2
    Wp = W + 2 * pad
    h_per = (k - 1) // s + h_out          # deinterleaved rows needed per parity

    if grid_steps is None:
        # >=2 steps keeps both v7x TensorCores fed via the "parallel" batch
        # axis; the extra step costs ~0.35 us on single-core v5e/v6e, where
        # grid_steps=1 (whole batch in one step) is optimal.
        grid_steps = 2 if (N >= 2 and N % 2 == 0) else 1
    assert N % grid_steps == 0, "batch size must be divisible by grid_steps"
    nb = N // grid_steps

    # Fold BN (eval mode) into conv weights + per-channel bias (plain-JAX glue).
    scale1 = p["g1"] / jnp.sqrt(p["v1"] + eps)
    bias1 = p["b1"] - p["m1"] * scale1
    # layout (c, kh, o) -> flat index (c*k + kh)*o1 + o
    w1_eff = jnp.transpose(p["w1"][..., 0] * scale1[:, None, None],
                           (1, 2, 0)).reshape(-1)

    scale2 = p["g2"] / jnp.sqrt(p["v2"] + eps)
    bias2 = p["b2"] - p["m2"] * scale2
    # layout (g, kw, j) -> flat index (g*k + kw)*o2 + j
    w2_eff = jnp.transpose((p["w2"][:, 0, 0, :] * scale2[:, None]).reshape(o1, o2, k),
                           (0, 2, 1)).reshape(-1)

    kern = functools.partial(_fused_kernel, nb=nb, c1=c1, o1=o1, o2=o2, k=k,
                             s=s, pad=pad, H=H, W=W, h_out=h_out, w_out=w_out,
                             h_per=h_per, Wp=Wp)

    # VMEM budget: double-buffered input/output blocks + scratch.  Raise the
    # scoped limit only when blocks outgrow the smallest default (16 MiB on
    # v5e); re-derive Nb for v7x's 64 MiB physical VMEM at production sizes.
    block_bytes = 4 * (nb * c1 * H * W + nb * c2 * h_out * w_out)
    scr_bytes = 4 * (c1 * s * h_per * W + o1 * Wp * h_out)
    need = 2 * block_bytes + scr_bytes
    cp_kwargs = dict(dimension_semantics=("parallel",))
    if need > 12 * 2**20:
        cp_kwargs["vmem_limit_bytes"] = int(min(1.5 * need, 96 * 2**20))

    out = pl.pallas_call(
        kern,
        out_shape=jax.ShapeDtypeStruct((N, c2, h_out, w_out), jnp.float32),
        grid=(grid_steps,),
        in_specs=[
            pl.BlockSpec((nb, c1, H, W), lambda n: (n, 0, 0, 0)),
            pl.BlockSpec(memory_space=pltpu.MemorySpace.SMEM),
            pl.BlockSpec(memory_space=pltpu.MemorySpace.SMEM),
            pl.BlockSpec(memory_space=pltpu.MemorySpace.SMEM),
            pl.BlockSpec(memory_space=pltpu.MemorySpace.SMEM),
        ],
        out_specs=pl.BlockSpec((nb, c2, h_out, w_out), lambda n: (n, 0, 0, 0)),
        scratch_shapes=[
            pltpu.VMEM((c1 * s, h_per, W), jnp.float32),   # deinterleaved padded x
            pltpu.VMEM((o1, Wp, h_out), jnp.float32),      # transposed, W-padded y1
        ],
        compiler_params=pltpu.CompilerParams(**cp_kwargs),
    )(x, w1_eff, bias1, w2_eff, bias2)
    return out


# ------------------------ deterministic parameters -------------------------- #

def make_params(key, c1, o1, o2, k):
    kw1, kw2 = jax.random.split(key, 2)
    c2 = o1 * o2
    return dict(
        w1=0.25 * jax.random.normal(kw1, (o1, c1, k, 1), jnp.float32),
        g1=jnp.linspace(0.8, 1.2, o1, dtype=jnp.float32),
        b1=jnp.linspace(-0.1, 0.1, o1, dtype=jnp.float32),
        m1=jnp.linspace(-0.05, 0.05, o1, dtype=jnp.float32),
        v1=jnp.linspace(0.9, 1.1, o1, dtype=jnp.float32),
        w2=0.25 * jax.random.normal(kw2, (c2, 1, 1, k), jnp.float32),
        g2=jnp.linspace(1.1, 0.9, c2, dtype=jnp.float32),
        b2=jnp.linspace(0.05, -0.05, c2, dtype=jnp.float32),
        m2=jnp.linspace(-0.02, 0.02, c2, dtype=jnp.float32),
        v2=jnp.linspace(0.95, 1.05, c2, dtype=jnp.float32),
    )


# ---------------------------- pure-JAX reference ---------------------------- #

def ref_forward(x, p, *, k, s, o1, o2, eps=1e-5):
    pad = k // 2
    y = jax.lax.conv_general_dilated(
        x, p["w1"], window_strides=(s, 1), padding=((pad, pad), (0, 0)),
        dimension_numbers=("NCHW", "OIHW", "NCHW"),
        precision=jax.lax.Precision.HIGHEST)
    y = (y - p["m1"][None, :, None, None]) / jnp.sqrt(p["v1"][None, :, None, None] + eps)
    y = y * p["g1"][None, :, None, None] + p["b1"][None, :, None, None]
    z = jax.lax.conv_general_dilated(
        y, p["w2"], window_strides=(1, s), padding=((0, 0), (pad, pad)),
        dimension_numbers=("NCHW", "OIHW", "NCHW"),
        feature_group_count=o1,
        precision=jax.lax.Precision.HIGHEST)
    z = (z - p["m2"][None, :, None, None]) / jnp.sqrt(p["v2"][None, :, None, None] + eps)
    z = z * p["g2"][None, :, None, None] + p["b2"][None, :, None, None]
    n, c, hh, ww = z.shape
    # ChannelShuffle(groups=o1)
    z = z.reshape(n, o1, o2, hh, ww).transpose(0, 2, 1, 3, 4).reshape(n, c, hh, ww)
    return z


if __name__ == "__main__":
    N, c1, H, W = 2, 4, 16, 16
    o1, o2, k, s = 4, 2, 3, 2

    key = jax.random.PRNGKey(0)
    kx, kp = jax.random.split(key)
    x = jax.random.normal(kx, (N, c1, H, W), jnp.float32)
    params = make_params(kp, c1, o1, o2, k)

    ref = ref_forward(x, params, k=k, s=s, o1=o1, o2=o2)

    # default grid (2 steps -> both v7x TensorCores)
    out = spatial_sep_conv_sf(x, params, k=k, s=s, o1=o1, o2=o2)
    out = jax.block_until_ready(out)
    np.testing.assert_allclose(np.asarray(out), np.asarray(ref),
                               atol=1e-4, rtol=1e-4)

    # single-step variant (whole batch per step -- the v5e/v6e configuration)
    out1 = spatial_sep_conv_sf(x, params, k=k, s=s, o1=o1, o2=o2, grid_steps=1)
    out1 = jax.block_until_ready(out1)
    np.testing.assert_allclose(np.asarray(out1), np.asarray(ref),
                               atol=1e-4, rtol=1e-4)

    print("KERNEL_OK")
</pallas_src>

<mosaic_0001>
module attributes {stable_mosaic.version = 11 : i64} {
  func.func @_fused_kernel(%arg0: i32, %arg1: memref<1x4x16x16xf32, #tpu.memory_space<vmem>>, %arg2: memref<48xf32, #tpu.memory_space<smem>>, %arg3: memref<4xf32, #tpu.memory_space<smem>>, %arg4: memref<24xf32, #tpu.memory_space<smem>>, %arg5: memref<8xf32, #tpu.memory_space<smem>>, %arg6: memref<1x8x8x8xf32, #tpu.memory_space<vmem>>, %arg7: memref<8x9x16xf32, #tpu.memory_space<vmem>>, %arg8: memref<4x18x8xf32, #tpu.memory_space<vmem>>) attributes {dimension_semantics = [#tpu.dimension_semantics<parallel>], iteration_bounds = array<i64: 2>, scalar_prefetch = 0 : i64, scratch_operands = 2 : i64, tpu.core_type = #tpu.core_type<tc>, window_params = [{transform_indices = @transform_0, window_bounds = array<i64: 1, 4, 16, 16>}, {transform_indices = @transform_1, window_bounds = array<i64: 48>}, {transform_indices = @transform_2, window_bounds = array<i64: 4>}, {transform_indices = @transform_3, window_bounds = array<i64: 24>}, {transform_indices = @transform_4, window_bounds = array<i64: 8>}, {transform_indices = @transform_5, window_bounds = array<i64: 1, 8, 8, 8>}]} {
    %cst = arith.constant 0.000000e+00 : f32
    %0 = vector.broadcast %cst : f32 to vector<1x16xf32>
    %c0 = arith.constant 0 : index
    %c0_0 = arith.constant 0 : index
    %c0_1 = arith.constant 0 : index
    %1 = vector.load %arg7[%c0, %c0_0, %c0_1] : memref<8x9x16xf32, #tpu.memory_space<vmem>>, vector<1x1x16xf32>
    %2 = vector.shape_cast %1 : vector<1x1x16xf32> to vector<1x16xf32>
    %3 = vector.shape_cast %0 : vector<1x16xf32> to vector<1x1x16xf32>
    tpu.vector_store %arg7[%c0, %c0_0, %c0_1], %3 {strides = array<i32>} : memref<8x9x16xf32, #tpu.memory_space<vmem>>, vector<1x1x16xf32>,
    %cst_2 = arith.constant 0.000000e+00 : f32
    %4 = vector.broadcast %cst_2 : f32 to vector<1x16xf32>
    %c2 = arith.constant 2 : index
    %c0_3 = arith.constant 0 : index
    %c0_4 = arith.constant 0 : index
    %5 = vector.load %arg7[%c2, %c0_3, %c0_4] : memref<8x9x16xf32, #tpu.memory_space<vmem>>, vector<1x1x16xf32>
    %6 = vector.shape_cast %5 : vector<1x1x16xf32> to vector<1x16xf32>
    %7 = vector.shape_cast %4 : vector<1x16xf32> to vector<1x1x16xf32>
    tpu.vector_store %arg7[%c2, %c0_3, %c0_4], %7 {strides = array<i32>} : memref<8x9x16xf32, #tpu.memory_space<vmem>>, vector<1x1x16xf32>,
    %cst_5 = arith.constant 0.000000e+00 : f32
    %8 = vector.broadcast %cst_5 : f32 to vector<1x16xf32>
    %c4 = arith.constant 4 : index
    %c0_6 = arith.constant 0 : index
    %c0_7 = arith.constant 0 : index
    %9 = vector.load %arg7[%c4, %c0_6, %c0_7] : memref<8x9x16xf32, #tpu.memory_space<vmem>>, vector<1x1x16xf32>
    %10 = vector.shape_cast %9 : vector<1x1x16xf32> to vector<1x16xf32>
    %11 = vector.shape_cast %8 : vector<1x16xf32> to vector<1x1x16xf32>
    tpu.vector_store %arg7[%c4, %c0_6, %c0_7], %11 {strides = array<i32>} : memref<8x9x16xf32, #tpu.memory_space<vmem>>, vector<1x1x16xf32>,
    %cst_8 = arith.constant 0.000000e+00 : f32
    %12 = vector.broadcast %cst_8 : f32 to vector<1x16xf32>
    %c6 = arith.constant 6 : index
    %c0_9 = arith.constant 0 : index
    %c0_10 = arith.constant 0 : index
    %13 = vector.load %arg7[%c6, %c0_9, %c0_10] : memref<8x9x16xf32, #tpu.memory_space<vmem>>, vector<1x1x16xf32>
    %14 = vector.shape_cast %13 : vector<1x1x16xf32> to vector<1x16xf32>
    %15 = vector.shape_cast %12 : vector<1x16xf32> to vector<1x1x16xf32>
    tpu.vector_store %arg7[%c6, %c0_9, %c0_10], %15 {strides = array<i32>} : memref<8x9x16xf32, #tpu.memory_space<vmem>>, vector<1x1x16xf32>,
    %cst_11 = arith.constant 0.000000e+00 : f32
    %16 = vector.broadcast %cst_11 : f32 to vector<1x16xf32>
    %c1 = arith.constant 1 : index
    %c8 = arith.constant 8 : index
    %c0_12 = arith.constant 0 : index
    %17 = vector.load %arg7[%c1, %c8, %c0_12] : memref<8x9x16xf32, #tpu.memory_space<vmem>>, vector<1x1x16xf32>
    %18 = vector.shape_cast %17 : vector<1x1x16xf32> to vector<1x16xf32>
    %19 = vector.shape_cast %16 : vector<1x16xf32> to vector<1x1x16xf32>
    tpu.vector_store %arg7[%c1, %c8, %c0_12], %19 {strides = array<i32>} : memref<8x9x16xf32, #tpu.memory_space<vmem>>, vector<1x1x16xf32>,
    %cst_13 = arith.constant 0.000000e+00 : f32
    %20 = vector.broadcast %cst_13 : f32 to vector<1x16xf32>
    %c3 = arith.constant 3 : index
    %c8_14 = arith.constant 8 : index
    %c0_15 = arith.constant 0 : index
    %21 = vector.load %arg7[%c3, %c8_14, %c0_15] : memref<8x9x16xf32, #tpu.memory_space<vmem>>, vector<1x1x16xf32>
    %22 = vector.shape_cast %21 : vector<1x1x16xf32> to vector<1x16xf32>
    %23 = vector.shape_cast %20 : vector<1x16xf32> to vector<1x1x16xf32>
    tpu.vector_store %arg7[%c3, %c8_14, %c0_15], %23 {strides = array<i32>} : memref<8x9x16xf32, #tpu.memory_space<vmem>>, vector<1x1x16xf32>,
    %cst_16 = arith.constant 0.000000e+00 : f32
    %24 = vector.broadcast %cst_16 : f32 to vector<1x16xf32>
    %c5 = arith.constant 5 : index
    %c8_17 = arith.constant 8 : index
    %c0_18 = arith.constant 0 : index
    %25 = vector.load %arg7[%c5, %c8_17, %c0_18] : memref<8x9x16xf32, #tpu.memory_space<vmem>>, vector<1x1x16xf32>
    %26 = vector.shape_cast %25 : vector<1x1x16xf32> to vector<1x16xf32>
    %27 = vector.shape_cast %24 : vector<1x16xf32> to vector<1x1x16xf32>
    tpu.vector_store %arg7[%c5, %c8_17, %c0_18], %27 {strides = array<i32>} : memref<8x9x16xf32, #tpu.memory_space<vmem>>, vector<1x1x16xf32>,
    %cst_19 = arith.constant 0.000000e+00 : f32
    %28 = vector.broadcast %cst_19 : f32 to vector<1x16xf32>
    %c7 = arith.constant 7 : index
    %c8_20 = arith.constant 8 : index
    %c0_21 = arith.constant 0 : index
    %29 = vector.load %arg7[%c7, %c8_20, %c0_21] : memref<8x9x16xf32, #tpu.memory_space<vmem>>, vector<1x1x16xf32>
    %30 = vector.shape_cast %29 : vector<1x1x16xf32> to vector<1x16xf32>
    %31 = vector.shape_cast %28 : vector<1x16xf32> to vector<1x1x16xf32>
    tpu.vector_store %arg7[%c7, %c8_20, %c0_21], %31 {strides = array<i32>} : memref<8x9x16xf32, #tpu.memory_space<vmem>>, vector<1x1x16xf32>,
    %cst_22 = arith.constant 0.000000e+00 : f32
    %32 = vector.broadcast %cst_22 : f32 to vector<4x1x8xf32>
    %c0_23 = arith.constant 0 : index
    %c0_24 = arith.constant 0 : index
    %c0_25 = arith.constant 0 : index
    %33 = vector.load %arg8[%c0_23, %c0_24, %c0_25] : memref<4x18x8xf32, #tpu.memory_space<vmem>>, vector<4x1x8xf32>
    tpu.vector_store %arg8[%c0_23, %c0_24, %c0_25], %32 {strides = array<i32>} : memref<4x18x8xf32, #tpu.memory_space<vmem>>, vector<4x1x8xf32>,
    %cst_26 = arith.constant 0.000000e+00 : f32
    %34 = vector.broadcast %cst_26 : f32 to vector<4x1x8xf32>
    %c0_27 = arith.constant 0 : index
    %c17 = arith.constant 17 : index
    %c0_28 = arith.constant 0 : index
    %35 = vector.load %arg8[%c0_27, %c17, %c0_28] : memref<4x18x8xf32, #tpu.memory_space<vmem>>, vector<4x1x8xf32>
    tpu.vector_store %arg8[%c0_27, %c17, %c0_28], %34 {strides = array<i32>} : memref<4x18x8xf32, #tpu.memory_space<vmem>>, vector<4x1x8xf32>,
    %c0_29 = arith.constant 0 : index
    %c0_30 = arith.constant 0 : index
    %c1_31 = arith.constant 1 : index
    %c0_32 = arith.constant 0 : index
    %36 = tpu.strided_load %arg1[%c0_29, %c0_30, %c1_31, %c0_32] {strides = array<i32: 1, 1, 2, 1>} : memref<1x4x16x16xf32, #tpu.memory_space<vmem>>, vector<1x1x8x16xf32>
    %37 = vector.shape_cast %36 : vector<1x1x8x16xf32> to vector<8x16xf32>
    %c0_33 = arith.constant 0 : index
    %c1_34 = arith.constant 1 : index
    %c0_35 = arith.constant 0 : index
    %38 = vector.load %arg7[%c0_33, %c1_34, %c0_35] : memref<8x9x16xf32, #tpu.memory_space<vmem>>, vector<1x8x16xf32>
    %39 = vector.shape_cast %38 : vector<1x8x16xf32> to vector<8x16xf32>
    %40 = vector.shape_cast %37 : vector<8x16xf32> to vector<1x8x16xf32>
    tpu.vector_store %arg7[%c0_33, %c1_34, %c0_35], %40 {strides = array<i32>} : memref<8x9x16xf32, #tpu.memory_space<vmem>>, vector<1x8x16xf32>,
    %c0_36 = arith.constant 0 : index
    %c0_37 = arith.constant 0 : index
    %c0_38 = arith.constant 0 : index
    %c0_39 = arith.constant 0 : index
    %41 = tpu.strided_load %arg1[%c0_36, %c0_37, %c0_38, %c0_39] {strides = array<i32: 1, 1, 2, 1>} : memref<1x4x16x16xf32, #tpu.memory_space<vmem>>, vector<1x1x8x16xf32>
    %42 = vector.shape_cast %41 : vector<1x1x8x16xf32> to vector<8x16xf32>
    %c1_40 = arith.constant 1 : index
    %c0_41 = arith.constant 0 : index
    %c0_42 = arith.constant 0 : index
    %43 = vector.load %arg7[%c1_40, %c0_41, %c0_42] : memref<8x9x16xf32, #tpu.memory_space<vmem>>, vector<1x8x16xf32>
    %44 = vector.shape_cast %43 : vector<1x8x16xf32> to vector<8x16xf32>
    %45 = vector.shape_cast %42 : vector<8x16xf32> to vector<1x8x16xf32>
    tpu.vector_store %arg7[%c1_40, %c0_41, %c0_42], %45 {strides = array<i32>} : memref<8x9x16xf32, #tpu.memory_space<vmem>>, vector<1x8x16xf32>,
    %c0_43 = arith.constant 0 : index
    %c1_44 = arith.constant 1 : index
    %c1_45 = arith.constant 1 : index
    %c0_46 = arith.constant 0 : index
    %46 = tpu.strided_load %arg1[%c0_43, %c1_44, %c1_45, %c0_46] {strides = array<i32: 1, 1, 2, 1>} : memref<1x4x16x16xf32, #tpu.memory_space<vmem>>, vector<1x1x8x16xf32>
    %47 = vector.shape_cast %46 : vector<1x1x8x16xf32> to vector<8x16xf32>
    %c2_47 = arith.constant 2 : index
    %c1_48 = arith.constant 1 : index
    %c0_49 = arith.constant 0 : index
    %48 = vector.load %arg7[%c2_47, %c1_48, %c0_49] : memref<8x9x16xf32, #tpu.memory_space<vmem>>, vector<1x8x16xf32>
    %49 = vector.shape_cast %48 : vector<1x8x16xf32> to vector<8x16xf32>
    %50 = vector.shape_cast %47 : vector<8x16xf32> to vector<1x8x16xf32>
    tpu.vector_store %arg7[%c2_47, %c1_48, %c0_49], %50 {strides = array<i32>} : memref<8x9x16xf32, #tpu.memory_space<vmem>>, vector<1x8x16xf32>,
    %c0_50 = arith.constant 0 : index
    %c1_51 = arith.constant 1 : index
    %c0_52 = arith.constant 0 : index
    %c0_53 = arith.constant 0 : index
    %51 = tpu.strided_load %arg1[%c0_50, %c1_51, %c0_52, %c0_53] {strides = array<i32: 1, 1, 2, 1>} : memref<1x4x16x16xf32, #tpu.memory_space<vmem>>, vector<1x1x8x16xf32>
    %52 = vector.shape_cast %51 : vector<1x1x8x16xf32> to vector<8x16xf32>
    %c3_54 = arith.constant 3 : index
    %c0_55 = arith.constant 0 : index
    %c0_56 = arith.constant 0 : index
    %53 = vector.load %arg7[%c3_54, %c0_55, %c0_56] : memref<8x9x16xf32, #tpu.memory_space<vmem>>, vector<1x8x16xf32>
    %54 = vector.shape_cast %53 : vector<1x8x16xf32> to vector<8x16xf32>
    %55 = vector.shape_cast %52 : vector<8x16xf32> to vector<1x8x16xf32>
    tpu.vector_store %arg7[%c3_54, %c0_55, %c0_56], %55 {strides = array<i32>} : memref<8x9x16xf32, #tpu.memory_space<vmem>>, vector<1x8x16xf32>,
    %c0_57 = arith.constant 0 : index
    %c2_58 = arith.constant 2 : index
    %c1_59 = arith.constant 1 : index
    %c0_60 = arith.constant 0 : index
    %56 = tpu.strided_load %arg1[%c0_57, %c2_58, %c1_59, %c0_60] {strides = array<i32: 1, 1, 2, 1>} : memref<1x4x16x16xf32, #tpu.memory_space<vmem>>, vector<1x1x8x16xf32>
    %57 = vector.shape_cast %56 : vector<1x1x8x16xf32> to vector<8x16xf32>
    %c4_61 = arith.constant 4 : index
    %c1_62 = arith.constant 1 : index
    %c0_63 = arith.constant 0 : index
    %58 = vector.load %arg7[%c4_61, %c1_62, %c0_63] : memref<8x9x16xf32, #tpu.memory_space<vmem>>, vector<1x8x16xf32>
    %59 = vector.shape_cast %58 : vector<1x8x16xf32> to vector<8x16xf32>
    %60 = vector.shape_cast %57 : vector<8x16xf32> to vector<1x8x16xf32>
    tpu.vector_store %arg7[%c4_61, %c1_62, %c0_63], %60 {strides = array<i32>} : memref<8x9x16xf32, #tpu.memory_space<vmem>>, vector<1x8x16xf32>,
    %c0_64 = arith.constant 0 : index
    %c2_65 = arith.constant 2 : index
    %c0_66 = arith.constant 0 : index
    %c0_67 = arith.constant 0 : index
    %61 = tpu.strided_load %arg1[%c0_64, %c2_65, %c0_66, %c0_67] {strides = array<i32: 1, 1, 2, 1>} : memref<1x4x16x16xf32, #tpu.memory_space<vmem>>, vector<1x1x8x16xf32>
    %62 = vector.shape_cast %61 : vector<1x1x8x16xf32> to vector<8x16xf32>
    %c5_68 = arith.constant 5 : index
    %c0_69 = arith.constant 0 : index
    %c0_70 = arith.constant 0 : index
    %63 = vector.load %arg7[%c5_68, %c0_69, %c0_70] : memref<8x9x16xf32, #tpu.memory_space<vmem>>, vector<1x8x16xf32>
    %64 = vector.shape_cast %63 : vector<1x8x16xf32> to vector<8x16xf32>
    %65 = vector.shape_cast %62 : vector<8x16xf32> to vector<1x8x16xf32>
    tpu.vector_store %arg7[%c5_68, %c0_69, %c0_70], %65 {strides = array<i32>} : memref<8x9x16xf32, #tpu.memory_space<vmem>>, vector<1x8x16xf32>,
    %c0_71 = arith.constant 0 : index
    %c3_72 = arith.constant 3 : index
    %c1_73 = arith.constant 1 : index
    %c0_74 = arith.constant 0 : index
    %66 = tpu.strided_load %arg1[%c0_71, %c3_72, %c1_73, %c0_74] {strides = array<i32: 1, 1, 2, 1>} : memref<1x4x16x16xf32, #tpu.memory_space<vmem>>, vector<1x1x8x16xf32>
    %67 = vector.shape_cast %66 : vector<1x1x8x16xf32> to vector<8x16xf32>
    %c6_75 = arith.constant 6 : index
    %c1_76 = arith.constant 1 : index
    %c0_77 = arith.constant 0 : index
    %68 = vector.load %arg7[%c6_75, %c1_76, %c0_77] : memref<8x9x16xf32, #tpu.memory_space<vmem>>, vector<1x8x16xf32>
    %69 = vector.shape_cast %68 : vector<1x8x16xf32> to vector<8x16xf32>
    %70 = vector.shape_cast %67 : vector<8x16xf32> to vector<1x8x16xf32>
    tpu.vector_store %arg7[%c6_75, %c1_76, %c0_77], %70 {strides = array<i32>} : memref<8x9x16xf32, #tpu.memory_space<vmem>>, vector<1x8x16xf32>,
    %c0_78 = arith.constant 0 : index
    %c3_79 = arith.constant 3 : index
    %c0_80 = arith.constant 0 : index
    %c0_81 = arith.constant 0 : index
    %71 = tpu.strided_load %arg1[%c0_78, %c3_79, %c0_80, %c0_81] {strides = array<i32: 1, 1, 2, 1>} : memref<1x4x16x16xf32, #tpu.memory_space<vmem>>, vector<1x1x8x16xf32>
    %72 = vector.shape_cast %71 : vector<1x1x8x16xf32> to vector<8x16xf32>
    %c7_82 = arith.constant 7 : index
    %c0_83 = arith.constant 0 : index
    %c0_84 = arith.constant 0 : index
    %73 = vector.load %arg7[%c7_82, %c0_83, %c0_84] : memref<8x9x16xf32, #tpu.memory_space<vmem>>, vector<1x8x16xf32>
    %74 = vector.shape_cast %73 : vector<1x8x16xf32> to vector<8x16xf32>
    %75 = vector.shape_cast %72 : vector<8x16xf32> to vector<1x8x16xf32>
    tpu.vector_store %arg7[%c7_82, %c0_83, %c0_84], %75 {strides = array<i32>} : memref<8x9x16xf32, #tpu.memory_space<vmem>>, vector<1x8x16xf32>,
    %c0_85 = arith.constant 0 : index
    %76 = memref.load %arg3[%c0_85] : memref<4xf32, #tpu.memory_space<smem>>
    %77 = vector.broadcast %76 : f32 to vector<8x16xf32>
    %c1_86 = arith.constant 1 : index
    %78 = memref.load %arg3[%c1_86] : memref<4xf32, #tpu.memory_space<smem>>
    %79 = vector.broadcast %78 : f32 to vector<8x16xf32>
    %c2_87 = arith.constant 2 : index
    %80 = memref.load %arg3[%c2_87] : memref<4xf32, #tpu.memory_space<smem>>
    %81 = vector.broadcast %80 : f32 to vector<8x16xf32>
    %c3_88 = arith.constant 3 : index
    %82 = memref.load %arg3[%c3_88] : memref<4xf32, #tpu.memory_space<smem>>
    %83 = vector.broadcast %82 : f32 to vector<8x16xf32>
    %c0_89 = arith.constant 0 : index
    %c0_90 = arith.constant 0 : index
    %c0_91 = arith.constant 0 : index
    %84 = vector.load %arg7[%c0_89, %c0_90, %c0_91] : memref<8x9x16xf32, #tpu.memory_space<vmem>>, vector<1x8x16xf32>
    %85 = vector.shape_cast %84 : vector<1x8x16xf32> to vector<8x16xf32>
    %c0_92 = arith.constant 0 : index
    %86 = memref.load %arg2[%c0_92] : memref<48xf32, #tpu.memory_space<smem>>
    %87 = vector.broadcast %86 : f32 to vector<8x16xf32>
    %88 = arith.mulf %85, %87 : vector<8x16xf32>
    %89 = arith.addf %77, %88 : vector<8x16xf32>
    %c1_93 = arith.constant 1 : index
    %90 = memref.load %arg2[%c1_93] : memref<48xf32, #tpu.memory_space<smem>>
    %91 = vector.broadcast %90 : f32 to vector<8x16xf32>
    %92 = arith.mulf %85, %91 : vector<8x16xf32>
    %93 = arith.addf %79, %92 : vector<8x16xf32>
    %c2_94 = arith.constant 2 : index
    %94 = memref.load %arg2[%c2_94] : memref<48xf32, #tpu.memory_space<smem>>
    %95 = vector.broadcast %94 : f32 to vector<8x16xf32>
    %96 = arith.mulf %85, %95 : vector<8x16xf32>
    %97 = arith.addf %81, %96 : vector<8x16xf32>
    %c3_95 = arith.constant 3 : index
    %98 = memref.load %arg2[%c3_95] : memref<48xf32, #tpu.memory_space<smem>>
    %99 = vector.broadcast %98 : f32 to vector<8x16xf32>
    %100 = arith.mulf %85, %99 : vector<8x16xf32>
    %101 = arith.addf %83, %100 : vector<8x16xf32>
    %c1_96 = arith.constant 1 : index
    %c0_97 = arith.constant 0 : index
    %c0_98 = arith.constant 0 : index
    %102 = vector.load %arg7[%c1_96, %c0_97, %c0_98] : memref<8x9x16xf32, #tpu.memory_space<vmem>>, vector<1x8x16xf32>
    %103 = vector.shape_cast %102 : vector<1x8x16xf32> to vector<8x16xf32>
    %c4_99 = arith.constant 4 : index
    %104 = memref.load %arg2[%c4_99] : memref<48xf32, #tpu.memory_space<smem>>
    %105 = vector.broadcast %104 : f32 to vector<8x16xf32>
    %106 = arith.mulf %103, %105 : vector<8x16xf32>
    %107 = arith.addf %89, %106 : vector<8x16xf32>
    %c5_100 = arith.constant 5 : index
    %108 = memref.load %arg2[%c5_100] : memref<48xf32, #tpu.memory_space<smem>>
    %109 = vector.broadcast %108 : f32 to vector<8x16xf32>
    %110 = arith.mulf %103, %109 : vector<8x16xf32>
    %111 = arith.addf %93, %110 : vector<8x16xf32>
    %c6_101 = arith.constant 6 : index
    %112 = memref.load %arg2[%c6_101] : memref<48xf32, #tpu.memory_space<smem>>
    %113 = vector.broadcast %112 : f32 to vector<8x16xf32>
    %114 = arith.mulf %103, %113 : vector<8x16xf32>
    %115 = arith.addf %97, %114 : vector<8x16xf32>
    %c7_102 = arith.constant 7 : index
    %116 = memref.load %arg2[%c7_102] : memref<48xf32, #tpu.memory_space<smem>>
    %117 = vector.broadcast %116 : f32 to vector<8x16xf32>
    %118 = arith.mulf %103, %117 : vector<8x16xf32>
    %119 = arith.addf %101, %118 : vector<8x16xf32>
    %c0_103 = arith.constant 0 : index
    %c1_104 = arith.constant 1 : index
    %c0_105 = arith.constant 0 : index
    %120 = vector.load %arg7[%c0_103, %c1_104, %c0_105] : memref<8x9x16xf32, #tpu.memory_space<vmem>>, vector<1x8x16xf32>
    %121 = vector.shape_cast %120 : vector<1x8x16xf32> to vector<8x16xf32>
    %c8_106 = arith.constant 8 : index
    %122 = memref.load %arg2[%c8_106] : memref<48xf32, #tpu.memory_space<smem>>
    %123 = vector.broadcast %122 : f32 to vector<8x16xf32>
    %124 = arith.mulf %121, %123 : vector<8x16xf32>
    %125 = arith.addf %107, %124 : vector<8x16xf32>
    %c9 = arith.constant 9 : index
    %126 = memref.load %arg2[%c9] : memref<48xf32, #tpu.memory_space<smem>>
    %127 = vector.broadcast %126 : f32 to vector<8x16xf32>
    %128 = arith.mulf %121, %127 : vector<8x16xf32>
    %129 = arith.addf %111, %128 : vector<8x16xf32>
    %c10 = arith.constant 10 : index
    %130 = memref.load %arg2[%c10] : memref<48xf32, #tpu.memory_space<smem>>
    %131 = vector.broadcast %130 : f32 to vector<8x16xf32>
    %132 = arith.mulf %121, %131 : vector<8x16xf32>
    %133 = arith.addf %115, %132 : vector<8x16xf32>
    %c11 = arith.constant 11 : index
    %134 = memref.load %arg2[%c11] : memref<48xf32, #tpu.memory_space<smem>>
    %135 = vector.broadcast %134 : f32 to vector<8x16xf32>
    %136 = arith.mulf %121, %135 : vector<8x16xf32>
    %137 = arith.addf %119, %136 : vector<8x16xf32>
    %c2_107 = arith.constant 2 : index
    %c0_108 = arith.constant 0 : index
    %c0_109 = arith.constant 0 : index
    %138 = vector.load %arg7[%c2_107, %c0_108, %c0_109] : memref<8x9x16xf32, #tpu.memory_space<vmem>>, vector<1x8x16xf32>
    %139 = vector.shape_cast %138 : vector<1x8x16xf32> to vector<8x16xf32>
    %c12 = arith.constant 12 : index
    %140 = memref.load %arg2[%c12] : memref<48xf32, #tpu.memory_space<smem>>
    %141 = vector.broadcast %140 : f32 to vector<8x16xf32>
    %142 = arith.mulf %139, %141 : vector<8x16xf32>
    %143 = arith.addf %125, %142 : vector<8x16xf32>
    %c13 = arith.constant 13 : index
    %144 = memref.load %arg2[%c13] : memref<48xf32, #tpu.memory_space<smem>>
    %145 = vector.broadcast %144 : f32 to vector<8x16xf32>
    %146 = arith.mulf %139, %145 : vector<8x16xf32>
    %147 = arith.addf %129, %146 : vector<8x16xf32>
    %c14 = arith.constant 14 : index
    %148 = memref.load %arg2[%c14] : memref<48xf32, #tpu.memory_space<smem>>
    %149 = vector.broadcast %148 : f32 to vector<8x16xf32>
    %150 = arith.mulf %139, %149 : vector<8x16xf32>
    %151 = arith.addf %133, %150 : vector<8x16xf32>
    %c15 = arith.constant 15 : index
    %152 = memref.load %arg2[%c15] : memref<48xf32, #tpu.memory_space<smem>>
    %153 = vector.broadcast %152 : f32 to vector<8x16xf32>
    %154 = arith.mulf %139, %153 : vector<8x16xf32>
    %155 = arith.addf %137, %154 : vector<8x16xf32>
    %c3_110 = arith.constant 3 : index
    %c0_111 = arith.constant 0 : index
    %c0_112 = arith.constant 0 : index
    %156 = vector.load %arg7[%c3_110, %c0_111, %c0_112] : memref<8x9x16xf32, #tpu.memory_space<vmem>>, vector<1x8x16xf32>
    %157 = vector.shape_cast %156 : vector<1x8x16xf32> to vector<8x16xf32>
    %c16 = arith.constant 16 : index
    %158 = memref.load %arg2[%c16] : memref<48xf32, #tpu.memory_space<smem>>
    %159 = vector.broadcast %158 : f32 to vector<8x16xf32>
    %160 = arith.mulf %157, %159 : vector<8x16xf32>
    %161 = arith.addf %143, %160 : vector<8x16xf32>
    %c17_113 = arith.constant 17 : index
    %162 = memref.load %arg2[%c17_113] : memref<48xf32, #tpu.memory_space<smem>>
    %163 = vector.broadcast %162 : f32 to vector<8x16xf32>
    %164 = arith.mulf %157, %163 : vector<8x16xf32>
    %165 = arith.addf %147, %164 : vector<8x16xf32>
    %c18 = arith.constant 18 : index
    %166 = memref.load %arg2[%c18] : memref<48xf32, #tpu.memory_space<smem>>
    %167 = vector.broadcast %166 : f32 to vector<8x16xf32>
    %168 = arith.mulf %157, %167 : vector<8x16xf32>
    %169 = arith.addf %151, %168 : vector<8x16xf32>
    %c19 = arith.constant 19 : index
    %170 = memref.load %arg2[%c19] : memref<48xf32, #tpu.memory_space<smem>>
    %171 = vector.broadcast %170 : f32 to vector<8x16xf32>
    %172 = arith.mulf %157, %171 : vector<8x16xf32>
    %173 = arith.addf %155, %172 : vector<8x16xf32>
    %c2_114 = arith.constant 2 : index
    %c1_115 = arith.constant 1 : index
    %c0_116 = arith.constant 0 : index
    %174 = vector.load %arg7[%c2_114, %c1_115, %c0_116] : memref<8x9x16xf32, #tpu.memory_space<vmem>>, vector<1x8x16xf32>
    %175 = vector.shape_cast %174 : vector<1x8x16xf32> to vector<8x16xf32>
    %c20 = arith.constant 20 : index
    %176 = memref.load %arg2[%c20] : memref<48xf32, #tpu.memory_space<smem>>
    %177 = vector.broadcast %176 : f32 to vector<8x16xf32>
    %178 = arith.mulf %175, %177 : vector<8x16xf32>
    %179 = arith.addf %161, %178 : vector<8x16xf32>
    %c21 = arith.constant 21 : index
    %180 = memref.load %arg2[%c21] : memref<48xf32, #tpu.memory_space<smem>>
    %181 = vector.broadcast %180 : f32 to vector<8x16xf32>
    %182 = arith.mulf %175, %181 : vector<8x16xf32>
    %183 = arith.addf %165, %182 : vector<8x16xf32>
    %c22 = arith.constant 22 : index
    %184 = memref.load %arg2[%c22] : memref<48xf32, #tpu.memory_space<smem>>
    %185 = vector.broadcast %184 : f32 to vector<8x16xf32>
    %186 = arith.mulf %175, %185 : vector<8x16xf32>
    %187 = arith.addf %169, %186 : vector<8x16xf32>
    %c23 = arith.constant 23 : index
    %188 = memref.load %arg2[%c23] : memref<48xf32, #tpu.memory_space<smem>>
    %189 = vector.broadcast %188 : f32 to vector<8x16xf32>
    %190 = arith.mulf %175, %189 : vector<8x16xf32>
    %191 = arith.addf %173, %190 : vector<8x16xf32>
    %c4_117 = arith.constant 4 : index
    %c0_118 = arith.constant 0 : index
    %c0_119 = arith.constant 0 : index
    %192 = vector.load %arg7[%c4_117, %c0_118, %c0_119] : memref<8x9x16xf32, #tpu.memory_space<vmem>>, vector<1x8x16xf32>
    %193 = vector.shape_cast %192 : vector<1x8x16xf32> to vector<8x16xf32>
    %c24 = arith.constant 24 : index
    %194 = memref.load %arg2[%c24] : memref<48xf32, #tpu.memory_space<smem>>
    %195 = vector.broadcast %194 : f32 to vector<8x16xf32>
    %196 = arith.mulf %193, %195 : vector<8x16xf32>
    %197 = arith.addf %179, %196 : vector<8x16xf32>
    %c25 = arith.constant 25 : index
    %198 = memref.load %arg2[%c25] : memref<48xf32, #tpu.memory_space<smem>>
    %199 = vector.broadcast %198 : f32 to vector<8x16xf32>
    %200 = arith.mulf %193, %199 : vector<8x16xf32>
    %201 = arith.addf %183, %200 : vector<8x16xf32>
    %c26 = arith.constant 26 : index
    %202 = memref.load %arg2[%c26] : memref<48xf32, #tpu.memory_space<smem>>
    %203 = vector.broadcast %202 : f32 to vector<8x16xf32>
    %204 = arith.mulf %193, %203 : vector<8x16xf32>
    %205 = arith.addf %187, %204 : vector<8x16xf32>
    %c27 = arith.constant 27 : index
    %206 = memref.load %arg2[%c27] : memref<48xf32, #tpu.memory_space<smem>>
    %207 = vector.broadcast %206 : f32 to vector<8x16xf32>
    %208 = arith.mulf %193, %207 : vector<8x16xf32>
    %209 = arith.addf %191, %208 : vector<8x16xf32>
    %c5_120 = arith.constant 5 : index
    %c0_121 = arith.constant 0 : index
    %c0_122 = arith.constant 0 : index
    %210 = vector.load %arg7[%c5_120, %c0_121, %c0_122] : memref<8x9x16xf32, #tpu.memory_space<vmem>>, vector<1x8x16xf32>
    %211 = vector.shape_cast %210 : vector<1x8x16xf32> to vector<8x16xf32>
    %c28 = arith.constant 28 : index
    %212 = memref.load %arg2[%c28] : memref<48xf32, #tpu.memory_space<smem>>
    %213 = vector.broadcast %212 : f32 to vector<8x16xf32>
    %214 = arith.mulf %211, %213 : vector<8x16xf32>
    %215 = arith.addf %197, %214 : vector<8x16xf32>
    %c29 = arith.constant 29 : index
    %216 = memref.load %arg2[%c29] : memref<48xf32, #tpu.memory_space<smem>>
    %217 = vector.broadcast %216 : f32 to vector<8x16xf32>
    %218 = arith.mulf %211, %217 : vector<8x16xf32>
    %219 = arith.addf %201, %218 : vector<8x16xf32>
    %c30 = arith.constant 30 : index
    %220 = memref.load %arg2[%c30] : memref<48xf32, #tpu.memory_space<smem>>
    %221 = vector.broadcast %220 : f32 to vector<8x16xf32>
    %222 = arith.mulf %211, %221 : vector<8x16xf32>
    %223 = arith.addf %205, %222 : vector<8x16xf32>
    %c31 = arith.constant 31 : index
    %224 = memref.load %arg2[%c31] : memref<48xf32, #tpu.memory_space<smem>>
    %225 = vector.broadcast %224 : f32 to vector<8x16xf32>
    %226 = arith.mulf %211, %225 : vector<8x16xf32>
    %227 = arith.addf %209, %226 : vector<8x16xf32>
    %c4_123 = arith.constant 4 : index
    %c1_124 = arith.constant 1 : index
    %c0_125 = arith.constant 0 : index
    %228 = vector.load %arg7[%c4_123, %c1_124, %c0_125] : memref<8x9x16xf32, #tpu.memory_space<vmem>>, vector<1x8x16xf32>
    %229 = vector.shape_cast %228 : vector<1x8x16xf32> to vector<8x16xf32>
    %c32 = arith.constant 32 : index
    %230 = memref.load %arg2[%c32] : memref<48xf32, #tpu.memory_space<smem>>
    %231 = vector.broadcast %230 : f32 to vector<8x16xf32>
    %232 = arith.mulf %229, %231 : vector<8x16xf32>
    %233 = arith.addf %215, %232 : vector<8x16xf32>
    %c33 = arith.constant 33 : index
    %234 = memref.load %arg2[%c33] : memref<48xf32, #tpu.memory_space<smem>>
    %235 = vector.broadcast %234 : f32 to vector<8x16xf32>
    %236 = arith.mulf %229, %235 : vector<8x16xf32>
    %237 = arith.addf %219, %236 : vector<8x16xf32>
    %c34 = arith.constant 34 : index
    %238 = memref.load %arg2[%c34] : memref<48xf32, #tpu.memory_space<smem>>
    %239 = vector.broadcast %238 : f32 to vector<8x16xf32>
    %240 = arith.mulf %229, %239 : vector<8x16xf32>
    %241 = arith.addf %223, %240 : vector<8x16xf32>
    %c35 = arith.constant 35 : index
    %242 = memref.load %arg2[%c35] : memref<48xf32, #tpu.memory_space<smem>>
    %243 = vector.broadcast %242 : f32 to vector<8x16xf32>
    %244 = arith.mulf %229, %243 : vector<8x16xf32>
    %245 = arith.addf %227, %244 : vector<8x16xf32>
    %c6_126 = arith.constant 6 : index
    %c0_127 = arith.constant 0 : index
    %c0_128 = arith.constant 0 : index
    %246 = vector.load %arg7[%c6_126, %c0_127, %c0_128] : memref<8x9x16xf32, #tpu.memory_space<vmem>>, vector<1x8x16xf32>
    %247 = vector.shape_cast %246 : vector<1x8x16xf32> to vector<8x16xf32>
    %c36 = arith.constant 36 : index
    %248 = memref.load %arg2[%c36] : memref<48xf32, #tpu.memory_space<smem>>
    %249 = vector.broadcast %248 : f32 to vector<8x16xf32>
    %250 = arith.mulf %247, %249 : vector<8x16xf32>
    %251 = arith.addf %233, %250 : vector<8x16xf32>
    %c37 = arith.constant 37 : index
    %252 = memref.load %arg2[%c37] : memref<48xf32, #tpu.memory_space<smem>>
    %253 = vector.broadcast %252 : f32 to vector<8x16xf32>
    %254 = arith.mulf %247, %253 : vector<8x16xf32>
    %255 = arith.addf %237, %254 : vector<8x16xf32>
    %c38 = arith.constant 38 : index
    %256 = memref.load %arg2[%c38] : memref<48xf32, #tpu.memory_space<smem>>
    %257 = vector.broadcast %256 : f32 to vector<8x16xf32>
    %258 = arith.mulf %247, %257 : vector<8x16xf32>
    %259 = arith.addf %241, %258 : vector<8x16xf32>
    %c39 = arith.constant 39 : index
    %260 = memref.load %arg2[%c39] : memref<48xf32, #tpu.memory_space<smem>>
    %261 = vector.broadcast %260 : f32 to vector<8x16xf32>
    %262 = arith.mulf %247, %261 : vector<8x16xf32>
    %263 = arith.addf %245, %262 : vector<8x16xf32>
    %c7_129 = arith.constant 7 : index
    %c0_130 = arith.constant 0 : index
    %c0_131 = arith.constant 0 : index
    %264 = vector.load %arg7[%c7_129, %c0_130, %c0_131] : memref<8x9x16xf32, #tpu.memory_space<vmem>>, vector<1x8x16xf32>
    %265 = vector.shape_cast %264 : vector<1x8x16xf32> to vector<8x16xf32>
    %c40 = arith.constant 40 : index
    %266 = memref.load %arg2[%c40] : memref<48xf32, #tpu.memory_space<smem>>
    %267 = vector.broadcast %266 : f32 to vector<8x16xf32>
    %268 = arith.mulf %265, %267 : vector<8x16xf32>
    %269 = arith.addf %251, %268 : vector<8x16xf32>
    %c41 = arith.constant 41 : index
    %270 = memref.load %arg2[%c41] : memref<48xf32, #tpu.memory_space<smem>>
    %271 = vector.broadcast %270 : f32 to vector<8x16xf32>
    %272 = arith.mulf %265, %271 : vector<8x16xf32>
    %273 = arith.addf %255, %272 : vector<8x16xf32>
    %c42 = arith.constant 42 : index
    %274 = memref.load %arg2[%c42] : memref<48xf32, #tpu.memory_space<smem>>
    %275 = vector.broadcast %274 : f32 to vector<8x16xf32>
    %276 = arith.mulf %265, %275 : vector<8x16xf32>
    %277 = arith.addf %259, %276 : vector<8x16xf32>
    %c43 = arith.constant 43 : index
    %278 = memref.load %arg2[%c43] : memref<48xf32, #tpu.memory_space<smem>>
    %279 = vector.broadcast %278 : f32 to vector<8x16xf32>
    %280 = arith.mulf %265, %279 : vector<8x16xf32>
    %281 = arith.addf %263, %280 : vector<8x16xf32>
    %c6_132 = arith.constant 6 : index
    %c1_133 = arith.constant 1 : index
    %c0_134 = arith.constant 0 : index
    %282 = vector.load %arg7[%c6_132, %c1_133, %c0_134] : memref<8x9x16xf32, #tpu.memory_space<vmem>>, vector<1x8x16xf32>
    %283 = vector.shape_cast %282 : vector<1x8x16xf32> to vector<8x16xf32>
    %c44 = arith.constant 44 : index
    %284 = memref.load %arg2[%c44] : memref<48xf32, #tpu.memory_space<smem>>
    %285 = vector.broadcast %284 : f32 to vector<8x16xf32>
    %286 = arith.mulf %283, %285 : vector<8x16xf32>
    %287 = arith.addf %269, %286 : vector<8x16xf32>
    %c45 = arith.constant 45 : index
    %288 = memref.load %arg2[%c45] : memref<48xf32, #tpu.memory_space<smem>>
    %289 = vector.broadcast %288 : f32 to vector<8x16xf32>
    %290 = arith.mulf %283, %289 : vector<8x16xf32>
    %291 = arith.addf %273, %290 : vector<8x16xf32>
    %c46 = arith.constant 46 : index
    %292 = memref.load %arg2[%c46] : memref<48xf32, #tpu.memory_space<smem>>
    %293 = vector.broadcast %292 : f32 to vector<8x16xf32>
    %294 = arith.mulf %283, %293 : vector<8x16xf32>
    %295 = arith.addf %277, %294 : vector<8x16xf32>
    %c47 = arith.constant 47 : index
    %296 = memref.load %arg2[%c47] : memref<48xf32, #tpu.memory_space<smem>>
    %297 = vector.broadcast %296 : f32 to vector<8x16xf32>
    %298 = arith.mulf %283, %297 : vector<8x16xf32>
    %299 = arith.addf %281, %298 : vector<8x16xf32>
    %300 = tpu.transpose %287, [1, 0] : vector<8x16xf32> -> vector<16x8xf32>
    %301 = tpu.transpose %291, [1, 0] : vector<8x16xf32> -> vector<16x8xf32>
    %302 = tpu.transpose %295, [1, 0] : vector<8x16xf32> -> vector<16x8xf32>
    %303 = tpu.transpose %299, [1, 0] : vector<8x16xf32> -> vector<16x8xf32>
    %304 = vector.shape_cast %300 : vector<16x8xf32> to vector<1x16x8xf32>
    %305 = vector.shape_cast %301 : vector<16x8xf32> to vector<1x16x8xf32>
    %306 = vector.shape_cast %302 : vector<16x8xf32> to vector<1x16x8xf32>
    %307 = vector.shape_cast %303 : vector<16x8xf32> to vector<1x16x8xf32>
    %308 = tpu.concatenate %304, %305, %306, %307 in 0 : vector<1x16x8xf32>, vector<1x16x8xf32>, vector<1x16x8xf32>, vector<1x16x8xf32> -> vector<4x16x8xf32>
    %c0_135 = arith.constant 0 : index
    %c1_136 = arith.constant 1 : index
    %c0_137 = arith.constant 0 : index
    %309 = vector.load %arg8[%c0_135, %c1_136, %c0_137] : memref<4x18x8xf32, #tpu.memory_space<vmem>>, vector<4x16x8xf32>
    tpu.vector_store %arg8[%c0_135, %c1_136, %c0_137], %308 {strides = array<i32>} : memref<4x18x8xf32, #tpu.memory_space<vmem>>, vector<4x16x8xf32>,
    %c0_138 = arith.constant 0 : index
    %310 = memref.load %arg5[%c0_138] : memref<8xf32, #tpu.memory_space<smem>>
    %311 = vector.broadcast %310 : f32 to vector<8x8xf32>
    %c1_139 = arith.constant 1 : index
    %312 = memref.load %arg5[%c1_139] : memref<8xf32, #tpu.memory_space<smem>>
    %313 = vector.broadcast %312 : f32 to vector<8x8xf32>
    %c0_140 = arith.constant 0 : index
    %c0_141 = arith.constant 0 : index
    %c0_142 = arith.constant 0 : index
    %314 = tpu.strided_load %arg8[%c0_140, %c0_141, %c0_142] {strides = array<i32: 1, 2, 1>} : memref<4x18x8xf32, #tpu.memory_space<vmem>>, vector<1x8x8xf32>
    %315 = vector.shape_cast %314 : vector<1x8x8xf32> to vector<8x8xf32>
    %c0_143 = arith.constant 0 : index
    %316 = memref.load %arg4[%c0_143] : memref<24xf32, #tpu.memory_space<smem>>
    %317 = vector.broadcast %316 : f32 to vector<8x8xf32>
    %318 = arith.mulf %315, %317 : vector<8x8xf32>
    %319 = arith.addf %311, %318 : vector<8x8xf32>
    %c1_144 = arith.constant 1 : index
    %320 = memref.load %arg4[%c1_144] : memref<24xf32, #tpu.memory_space<smem>>
    %321 = vector.broadcast %320 : f32 to vector<8x8xf32>
    %322 = arith.mulf %315, %321 : vector<8x8xf32>
    %323 = arith.addf %313, %322 : vector<8x8xf32>
    %c0_145 = arith.constant 0 : index
    %c1_146 = arith.constant 1 : index
    %c0_147 = arith.constant 0 : index
    %324 = tpu.strided_load %arg8[%c0_145, %c1_146, %c0_147] {strides = array<i32: 1, 2, 1>} : memref<4x18x8xf32, #tpu.memory_space<vmem>>, vector<1x8x8xf32>
    %325 = vector.shape_cast %324 : vector<1x8x8xf32> to vector<8x8xf32>
    %c2_148 = arith.constant 2 : index
    %326 = memref.load %arg4[%c2_148] : memref<24xf32, #tpu.memory_space<smem>>
    %327 = vector.broadcast %326 : f32 to vector<8x8xf32>
    %328 = arith.mulf %325, %327 : vector<8x8xf32>
    %329 = arith.addf %319, %328 : vector<8x8xf32>
    %c3_149 = arith.constant 3 : index
    %330 = memref.load %arg4[%c3_149] : memref<24xf32, #tpu.memory_space<smem>>
    %331 = vector.broadcast %330 : f32 to vector<8x8xf32>
    %332 = arith.mulf %325, %331 : vector<8x8xf32>
    %333 = arith.addf %323, %332 : vector<8x8xf32>
    %c0_150 = arith.constant 0 : index
    %c2_151 = arith.constant 2 : index
    %c0_152 = arith.constant 0 : index
    %334 = tpu.strided_load %arg8[%c0_150, %c2_151, %c0_152] {strides = array<i32: 1, 2, 1>} : memref<4x18x8xf32, #tpu.memory_space<vmem>>, vector<1x8x8xf32>
    %335 = vector.shape_cast %334 : vector<1x8x8xf32> to vector<8x8xf32>
    %c4_153 = arith.constant 4 : index
    %336 = memref.load %arg4[%c4_153] : memref<24xf32, #tpu.memory_space<smem>>
    %337 = vector.broadcast %336 : f32 to vector<8x8xf32>
    %338 = arith.mulf %335, %337 : vector<8x8xf32>
    %339 = arith.addf %329, %338 : vector<8x8xf32>
    %c5_154 = arith.constant 5 : index
    %340 = memref.load %arg4[%c5_154] : memref<24xf32, #tpu.memory_space<smem>>
    %341 = vector.broadcast %340 : f32 to vector<8x8xf32>
    %342 = arith.mulf %335, %341 : vector<8x8xf32>
    %343 = arith.addf %333, %342 : vector<8x8xf32>
    %344 = tpu.transpose %339, [1, 0] : vector<8x8xf32> -> vector<8x8xf32>
    %345 = tpu.transpose %343, [1, 0] : vector<8x8xf32> -> vector<8x8xf32>
    %c2_155 = arith.constant 2 : index
    %346 = memref.load %arg5[%c2_155] : memref<8xf32, #tpu.memory_space<smem>>
    %347 = vector.broadcast %346 : f32 to vector<8x8xf32>
    %c3_156 = arith.constant 3 : index
    %348 = memref.load %arg5[%c3_156] : memref<8xf32, #tpu.memory_space<smem>>
    %349 = vector.broadcast %348 : f32 to vector<8x8xf32>
    %c1_157 = arith.constant 1 : index
    %c0_158 = arith.constant 0 : index
    %c0_159 = arith.constant 0 : index
    %350 = tpu.strided_load %arg8[%c1_157, %c0_158, %c0_159] {strides = array<i32: 1, 2, 1>} : memref<4x18x8xf32, #tpu.memory_space<vmem>>, vector<1x8x8xf32>
    %351 = vector.shape_cast %350 : vector<1x8x8xf32> to vector<8x8xf32>
    %c6_160 = arith.constant 6 : index
    %352 = memref.load %arg4[%c6_160] : memref<24xf32, #tpu.memory_space<smem>>
    %353 = vector.broadcast %352 : f32 to vector<8x8xf32>
    %354 = arith.mulf %351, %353 : vector<8x8xf32>
    %355 = arith.addf %347, %354 : vector<8x8xf32>
    %c7_161 = arith.constant 7 : index
    %356 = memref.load %arg4[%c7_161] : memref<24xf32, #tpu.memory_space<smem>>
    %357 = vector.broadcast %356 : f32 to vector<8x8xf32>
    %358 = arith.mulf %351, %357 : vector<8x8xf32>
    %359 = arith.addf %349, %358 : vector<8x8xf32>
    %c1_162 = arith.constant 1 : index
    %c1_163 = arith.constant 1 : index
    %c0_164 = arith.constant 0 : index
    %360 = tpu.strided_load %arg8[%c1_162, %c1_163, %c0_164] {strides = array<i32: 1, 2, 1>} : memref<4x18x8xf32, #tpu.memory_space<vmem>>, vector<1x8x8xf32>
    %361 = vector.shape_cast %360 : vector<1x8x8xf32> to vector<8x8xf32>
    %c8_165 = arith.constant 8 : index
    %362 = memref.load %arg4[%c8_165] : memref<24xf32, #tpu.memory_space<smem>>
    %363 = vector.broadcast %362 : f32 to vector<8x8xf32>
    %364 = arith.mulf %361, %363 : vector<8x8xf32>
    %365 = arith.addf %355, %364 : vector<8x8xf32>
    %c9_166 = arith.constant 9 : index
    %366 = memref.load %arg4[%c9_166] : memref<24xf32, #tpu.memory_space<smem>>
    %367 = vector.broadcast %366 : f32 to vector<8x8xf32>
    %368 = arith.mulf %361, %367 : vector<8x8xf32>
    %369 = arith.addf %359, %368 : vector<8x8xf32>
    %c1_167 = arith.constant 1 : index
    %c2_168 = arith.constant 2 : index
    %c0_169 = arith.constant 0 : index
    %370 = tpu.strided_load %arg8[%c1_167, %c2_168, %c0_169] {strides = array<i32: 1, 2, 1>} : memref<4x18x8xf32, #tpu.memory_space<vmem>>, vector<1x8x8xf32>
    %371 = vector.shape_cast %370 : vector<1x8x8xf32> to vector<8x8xf32>
    %c10_170 = arith.constant 10 : index
    %372 = memref.load %arg4[%c10_170] : memref<24xf32, #tpu.memory_space<smem>>
    %373 = vector.broadcast %372 : f32 to vector<8x8xf32>
    %374 = arith.mulf %371, %373 : vector<8x8xf32>
    %375 = arith.addf %365, %374 : vector<8x8xf32>
    %c11_171 = arith.constant 11 : index
    %376 = memref.load %arg4[%c11_171] : memref<24xf32, #tpu.memory_space<smem>>
    %377 = vector.broadcast %376 : f32 to vector<8x8xf32>
    %378 = arith.mulf %371, %377 : vector<8x8xf32>
    %379 = arith.addf %369, %378 : vector<8x8xf32>
    %380 = tpu.transpose %375, [1, 0] : vector<8x8xf32> -> vector<8x8xf32>
    %381 = tpu.transpose %379, [1, 0] : vector<8x8xf32> -> vector<8x8xf32>
    %c4_172 = arith.constant 4 : index
    %382 = memref.load %arg5[%c4_172] : memref<8xf32, #tpu.memory_space<smem>>
    %383 = vector.broadcast %382 : f32 to vector<8x8xf32>
    %c5_173 = arith.constant 5 : index
    %384 = memref.load %arg5[%c5_173] : memref<8xf32, #tpu.memory_space<smem>>
    %385 = vector.broadcast %384 : f32 to vector<8x8xf32>
    %c2_174 = arith.constant 2 : index
    %c0_175 = arith.constant 0 : index
    %c0_176 = arith.constant 0 : index
    %386 = tpu.strided_load %arg8[%c2_174, %c0_175, %c0_176] {strides = array<i32: 1, 2, 1>} : memref<4x18x8xf32, #tpu.memory_space<vmem>>, vector<1x8x8xf32>
    %387 = vector.shape_cast %386 : vector<1x8x8xf32> to vector<8x8xf32>
    %c12_177 = arith.constant 12 : index
    %388 = memref.load %arg4[%c12_177] : memref<24xf32, #tpu.memory_space<smem>>
    %389 = vector.broadcast %388 : f32 to vector<8x8xf32>
    %390 = arith.mulf %387, %389 : vector<8x8xf32>
    %391 = arith.addf %383, %390 : vector<8x8xf32>
    %c13_178 = arith.constant 13 : index
    %392 = memref.load %arg4[%c13_178] : memref<24xf32, #tpu.memory_space<smem>>
    %393 = vector.broadcast %392 : f32 to vector<8x8xf32>
    %394 = arith.mulf %387, %393 : vector<8x8xf32>
    %395 = arith.addf %385, %394 : vector<8x8xf32>
    %c2_179 = arith.constant 2 : index
    %c1_180 = arith.constant 1 : index
    %c0_181 = arith.constant 0 : index
    %396 = tpu.strided_load %arg8[%c2_179, %c1_180, %c0_181] {strides = array<i32: 1, 2, 1>} : memref<4x18x8xf32, #tpu.memory_space<vmem>>, vector<1x8x8xf32>
    %397 = vector.shape_cast %396 : vector<1x8x8xf32> to vector<8x8xf32>
    %c14_182 = arith.constant 14 : index
    %398 = memref.load %arg4[%c14_182] : memref<24xf32, #tpu.memory_space<smem>>
    %399 = vector.broadcast %398 : f32 to vector<8x8xf32>
    %400 = arith.mulf %397, %399 : vector<8x8xf32>
    %401 = arith.addf %391, %400 : vector<8x8xf32>
    %c15_183 = arith.constant 15 : index
    %402 = memref.load %arg4[%c15_183] : memref<24xf32, #tpu.memory_space<smem>>
    %403 = vector.broadcast %402 : f32 to vector<8x8xf32>
    %404 = arith.mulf %397, %403 : vector<8x8xf32>
    %405 = arith.addf %395, %404 : vector<8x8xf32>
    %c2_184 = arith.constant 2 : index
    %c2_185 = arith.constant 2 : index
    %c0_186 = arith.constant 0 : index
    %406 = tpu.strided_load %arg8[%c2_184, %c2_185, %c0_186] {strides = array<i32: 1, 2, 1>} : memref<4x18x8xf32, #tpu.memory_space<vmem>>, vector<1x8x8xf32>
    %407 = vector.shape_cast %406 : vector<1x8x8xf32> to vector<8x8xf32>
    %c16_187 = arith.constant 16 : index
    %408 = memref.load %arg4[%c16_187] : memref<24xf32, #tpu.memory_space<smem>>
    %409 = vector.broadcast %408 : f32 to vector<8x8xf32>
    %410 = arith.mulf %407, %409 : vector<8x8xf32>
    %411 = arith.addf %401, %410 : vector<8x8xf32>
    %c17_188 = arith.constant 17 : index
    %412 = memref.load %arg4[%c17_188] : memref<24xf32, #tpu.memory_space<smem>>
    %413 = vector.broadcast %412 : f32 to vector<8x8xf32>
    %414 = arith.mulf %407, %413 : vector<8x8xf32>
    %415 = arith.addf %405, %414 : vector<8x8xf32>
    %416 = tpu.transpose %411, [1, 0] : vector<8x8xf32> -> vector<8x8xf32>
    %417 = tpu.transpose %415, [1, 0] : vector<8x8xf32> -> vector<8x8xf32>
    %c6_189 = arith.constant 6 : index
    %418 = memref.load %arg5[%c6_189] : memref<8xf32, #tpu.memory_space<smem>>
    %419 = vector.broadcast %418 : f32 to vector<8x8xf32>
    %c7_190 = arith.constant 7 : index
    %420 = memref.load %arg5[%c7_190] : memref<8xf32, #tpu.memory_space<smem>>
    %421 = vector.broadcast %420 : f32 to vector<8x8xf32>
    %c3_191 = arith.constant 3 : index
    %c0_192 = arith.constant 0 : index
    %c0_193 = arith.constant 0 : index
    %422 = tpu.strided_load %arg8[%c3_191, %c0_192, %c0_193] {strides = array<i32: 1, 2, 1>} : memref<4x18x8xf32, #tpu.memory_space<vmem>>, vector<1x8x8xf32>
    %423 = vector.shape_cast %422 : vector<1x8x8xf32> to vector<8x8xf32>
    %c18_194 = arith.constant 18 : index
    %424 = memref.load %arg4[%c18_194] : memref<24xf32, #tpu.memory_space<smem>>
    %425 = vector.broadcast %424 : f32 to vector<8x8xf32>
    %426 = arith.mulf %423, %425 : vector<8x8xf32>
    %427 = arith.addf %419, %426 : vector<8x8xf32>
    %c19_195 = arith.constant 19 : index
    %428 = memref.load %arg4[%c19_195] : memref<24xf32, #tpu.memory_space<smem>>
    %429 = vector.broadcast %428 : f32 to vector<8x8xf32>
    %430 = arith.mulf %423, %429 : vector<8x8xf32>
    %431 = arith.addf %421, %430 : vector<8x8xf32>
    %c3_196 = arith.constant 3 : index
    %c1_197 = arith.constant 1 : index
    %c0_198 = arith.constant 0 : index
    %432 = tpu.strided_load %arg8[%c3_196, %c1_197, %c0_198] {strides = array<i32: 1, 2, 1>} : memref<4x18x8xf32, #tpu.memory_space<vmem>>, vector<1x8x8xf32>
    %433 = vector.shape_cast %432 : vector<1x8x8xf32> to vector<8x8xf32>
    %c20_199 = arith.constant 20 : index
    %434 = memref.load %arg4[%c20_199] : memref<24xf32, #tpu.memory_space<smem>>
    %435 = vector.broadcast %434 : f32 to vector<8x8xf32>
    %436 = arith.mulf %433, %435 : vector<8x8xf32>
    %437 = arith.addf %427, %436 : vector<8x8xf32>
    %c21_200 = arith.constant 21 : index
    %438 = memref.load %arg4[%c21_200] : memref<24xf32, #tpu.memory_space<smem>>
    %439 = vector.broadcast %438 : f32 to vector<8x8xf32>
    %440 = arith.mulf %433, %439 : vector<8x8xf32>
    %441 = arith.addf %431, %440 : vector<8x8xf32>
    %c3_201 = arith.constant 3 : index
    %c2_202 = arith.constant 2 : index
    %c0_203 = arith.constant 0 : index
    %442 = tpu.strided_load %arg8[%c3_201, %c2_202, %c0_203] {strides = array<i32: 1, 2, 1>} : memref<4x18x8xf32, #tpu.memory_space<vmem>>, vector<1x8x8xf32>
    %443 = vector.shape_cast %442 : vector<1x8x8xf32> to vector<8x8xf32>
    %c22_204 = arith.constant 22 : index
    %444 = memref.load %arg4[%c22_204] : memref<24xf32, #tpu.memory_space<smem>>
    %445 = vector.broadcast %444 : f32 to vector<8x8xf32>
    %446 = arith.mulf %443, %445 : vector<8x8xf32>
    %447 = arith.addf %437, %446 : vector<8x8xf32>
    %c23_205 = arith.constant 23 : index
    %448 = memref.load %arg4[%c23_205] : memref<24xf32, #tpu.memory_space<smem>>
    %449 = vector.broadcast %448 : f32 to vector<8x8xf32>
    %450 = arith.mulf %443, %449 : vector<8x8xf32>
    %451 = arith.addf %441, %450 : vector<8x8xf32>
    %452 = tpu.transpose %447, [1, 0] : vector<8x8xf32> -> vector<8x8xf32>
    %453 = tpu.transpose %451, [1, 0] : vector<8x8xf32> -> vector<8x8xf32>
    %454 = vector.shape_cast %344 : vector<8x8xf32> to vector<1x8x8xf32>
    %455 = vector.shape_cast %380 : vector<8x8xf32> to vector<1x8x8xf32>
    %456 = vector.shape_cast %416 : vector<8x8xf32> to vector<1x8x8xf32>
    %457 = vector.shape_cast %452 : vector<8x8xf32> to vector<1x8x8xf32>
    %458 = vector.shape_cast %345 : vector<8x8xf32> to vector<1x8x8xf32>
    %459 = vector.shape_cast %381 : vector<8x8xf32> to vector<1x8x8xf32>
    %460 = vector.shape_cast %417 : vector<8x8xf32> to vector<1x8x8xf32>
    %461 = vector.shape_cast %453 : vector<8x8xf32> to vector<1x8x8xf32>
    %462 = tpu.concatenate %454, %455, %456, %457, %458, %459, %460, %461 in 0 : vector<1x8x8xf32>, vector<1x8x8xf32>, vector<1x8x8xf32>, vector<1x8x8xf32>, vector<1x8x8xf32>, vector<1x8x8xf32>, vector<1x8x8xf32>, vector<1x8x8xf32> -> vector<8x8x8xf32>
    %c0_206 = arith.constant 0 : index
    %c0_207 = arith.constant 0 : index
    %c0_208 = arith.constant 0 : index
    %c0_209 = arith.constant 0 : index
    %463 = vector.load %arg6[%c0_206, %c0_207, %c0_208, %c0_209] : memref<1x8x8x8xf32, #tpu.memory_space<vmem>>, vector<1x8x8x8xf32>
    %464 = vector.shape_cast %463 : vector<1x8x8x8xf32> to vector<8x8x8xf32>
    %465 = vector.shape_cast %462 : vector<8x8x8xf32> to vector<1x8x8x8xf32>
    tpu.vector_store %arg6[%c0_206, %c0_207, %c0_208, %c0_209], %465 {strides = array<i32>} : memref<1x8x8x8xf32, #tpu.memory_space<vmem>>, vector<1x8x8x8xf32>,
    return
  }
  func.func @transform_0(%arg0: i32) -> (i32, i32, i32, i32) {
    %c0_i32 = arith.constant 0 : i32
    %c0_i32_0 = arith.constant 0 : i32
    %c0_i32_1 = arith.constant 0 : i32
    %c0_i32_2 = arith.constant 0 : i32
    return %arg0, %c0_i32, %c0_i32_0, %c0_i32_1 : i32, i32, i32, i32
  }
  func.func @transform_1(%arg0: i32) -> i32 {
    %c0_i32 = arith.constant 0 : i32
    %c0_i32_0 = arith.constant 0 : i32
    return %c0_i32 : i32
  }
  func.func @transform_2(%arg0: i32) -> i32 {
    %c0_i32 = arith.constant 0 : i32
    %c0_i32_0 = arith.constant 0 : i32
    return %c0_i32 : i32
  }
  func.func @transform_3(%arg0: i32) -> i32 {
    %c0_i32 = arith.constant 0 : i32
    %c0_i32_0 = arith.constant 0 : i32
    return %c0_i32 : i32
  }
  func.func @transform_4(%arg0: i32) -> i32 {
    %c0_i32 = arith.constant 0 : i32
    %c0_i32_0 = arith.constant 0 : i32
    return %c0_i32 : i32
  }
  func.func @transform_5(%arg0: i32) -> (i32, i32, i32, i32) {
    %c0_i32 = arith.constant 0 : i32
    %c0_i32_0 = arith.constant 0 : i32
    %c0_i32_1 = arith.constant 0 : i32
    %c0_i32_2 = arith.constant 0 : i32
    return %arg0, %c0_i32, %c0_i32_0, %c0_i32_1 : i32, i32, i32, i32
  }
}

</mosaic_0001>

<bundles_post_ra>
// kernel: tpu_custom_call.1
= control target key start
LH: loop header
LB: loop body
LE: loop exit
PB: predicated region body
PF: predicated region fallthrough
CT: control target
= control target key end

     0   :  { %10 = vsyncpa [#allocation5], 0  ;;  %s2103_s0 = inlined_call_operand.hbm [shape: f32[2,4,16,16], index: 0, kind: input, shape index: {}]   ;;  %s2104_s1 = inlined_call_operand.hbm [shape: f32[48], index: 1, kind: input, shape index: {}]   ;;  %s2105_s2 = inlined_call_operand.vmem [shape: f32[4], index: 2, kind: input, shape index: {}]   ;;  %s2106_s3 = inlined_call_operand.vmem [shape: f32[24], index: 3, kind: input, shape index: {}]   ;;  %s2107_s4 = inlined_call_operand.vmem [shape: f32[8], index: 4, kind: input, shape index: {}]   ;;  %s2108_s5 = inlined_call_operand.hbm [shape: f32[2,8,8,8], index: 5, kind: output, shape index: {}]  }
   0x1   :  { %12 = vsyncpa [#allocation5 + $0x1], 0 }
   0x2   :  { %13 = vsyncpa [#allocation7], 0 }
   0x3   :  { %14 = vsyncpa [#allocation8], 0 }
   0x4   :  { %15 = vsyncpa [#allocation12], 0 }
   0x5   :  { %16 = vsyncpa [#allocation6], 0 }
   0x6   :  { %18 = vsyncpa [#allocation6 + $0x1], 0  ;;  %s1647_s18 = smov 0   ;;  %s1649_s19 = smov 0  }
   0x7   :  { %s1651_s20 = smov 0   ;;  %s1653_s21 = smov 0  }
   0x8 LB: > { %s1668_s22 = sadd.s32 4294967295, %s1606_s21   ;;  %s1235_s23 = sadd.s32 4294967294, %s1606_s21   ;;  %s1606_s21 = sphi %s1653_s21, %s2120_s21   ;;  %s1602_s20 = sphi %s1651_s20, %s2119_s20   ;;  %s1598_s19 = sphi %s1649_s19, %s2118_s19   ;;  %s1594_s18 = sphi %s1647_s18, %s2117_s18  }
   0x9   : > { %p44_p0 = scmp.ne.s32.totalorder %s1598_s19, %s1594_s18  ;;  %p45_p1 = scmp.eq.s32.totalorder %s1668_s22, 0 }
   0xa   : > { %p152_p2 = scmp.eq.s32.totalorder %s1668_s22, 1  ;;  %p158_p3 = scmp.eq.s32.totalorder %s1235_s23, 1 }
   0xb   : > { %p1677_p4 = por %p45_p1, %p44_p0  ;;  %p1236_p5 = scmp.ge.s32.totalorder %s1606_s21, 1 }
   0xc   : > { %p1682_p6 = por %p158_p3, %p44_p0  ;;  %p165_p7 = scmp.lt.s32.totalorder %s1606_s21, 3 }
   0xd   : > { %s197_s28 = sshll.u32 %s2106_s3, 4  ;;  %s177_s7 = sshll.u32 %s2104_s1, 4  ;;  %s198_s28 = int_to_ptr.vmem [resolvable:$true] %s197_s28  ;;  %s178_s7 = int_to_ptr.hbm [resolvable:$true] %s177_s7 }
   0xe   : > { %p1690_p8 = pnand %p1236_p5, %p165_p7  ;;  %s187_s10 = sshll.u32 %s2105_s2, 4  ;;  %s188_s10 = int_to_ptr.vmem [resolvable:$true] %s187_s10 }
   0xf   : > { %s207_s13 = sshll.u32 %s2107_s4, 4  ;;  %s1608_s14 = smov [#allocation11]   ;;  %s208_s13 = int_to_ptr.vmem [resolvable:$true] %s207_s13 }
  0x10   : > { %p1366_p10 = pneg %p1690_p8  ;;  %s1609_s15 = smov [#allocation9]  }
  0x11   : > { %s1610_s16 = smov [#allocation10]   ;;  %s1611_s17 = smov [#allocation13]  }
  0x12   : > { %p1367_p11 = pnand %p1366_p10, %p45_p1  ;;  %s1709_s23 = sadd.s32 1, %s1606_s21  }
  0x13   : > { %s28_s26 = ssub.s32 %s1606_s21, %s1709_s23  ;;  %s31_s27 = sadd.s32 1, %s1602_s20 }
  0x14   : > { %1375 = dma.vmem_to_smem (!%p1367_p11), %s198_s28, 16, %s1608_s14, [#allocation12]  }
  0x15   : > { %1369 = dma.hbm_to_smem (!%p1367_p11), %s178_s7, 16, %s1609_s15, [#allocation7]  }
  0x16   : > { %1372 = dma.vmem_to_smem (!%p1367_p11), %s188_s10, 16, %s1610_s16, [#allocation8]  }
  0x17   : > { %1378 = dma.vmem_to_smem (!%p1367_p11), %s208_s13, 16, %s1611_s17, [#allocation12]  }
  0x18   : > { %p29_p12 = scmp.eq.s32.totalorder %s28_s26, 0  ;;  %p38_p13 = scmp.ne.s32.totalorder %s1602_s20, %s1598_s19 }
  0x19   : > { %p39_p0 = scmp.eq.s32.totalorder %s1606_s21, 0  ;;  %p1391_p7 = scmp.lt.s32.totalorder %s1606_s21, 2 }
  0x1a   : > { %s1718_s28 = scalar_select %p29_p12, %s1602_s20, %s31_s27  }
  0x1b   : > { %p40_p3 = por %p39_p0, %p38_p13  ;;  %p1722_p5 = por %p152_p2, %p38_p13 }
  0x1c   : > { %s218_s6 = sand.u32 1, %s1602_s20   ;;  %s1344_s8 = sshll.u32 %s1606_s21, 6 }
  0x1d   : > { %s1242_s7 = sshll.u32 %s218_s6, 6  ;;  %s227_s11 = scalar_lea.hbm %s2103_s0, %s1344_s8 }
  0x1e   : > { %s222_s12 = scalar_lea.vmem [#allocation4], %s1242_s7  ;;  %s228_s14 = sshll.u32 %s227_s11, 4  ;;  %s229_s14 = int_to_ptr.hbm [resolvable:$true] %s228_s14 }
  0x1f   : > { %s230_s13 = sshll.u32 %s222_s12, 4  ;;  %p1732_p10 = pnand %p1391_p7, %p40_p3  ;;  %s231_s13 = int_to_ptr.vmem [resolvable:$true] %s230_s13 }
  0x20   : > { %s219_s16 = scalar_lea.sflag [#allocation5], %s218_s6  ;;  %s1498_s17 = sshra.s32 %s229_s14, 4  ;;  %s1499_s17 = int_to_ptr.hbm [resolvable:$true] %s1498_s17 }
  0x21   : > { %s1500_s26 = scalar_lea.hbm %s1499_s17, 64  ;;  %p1502_p11 = pneg %p1732_p10 }
  0x22   : > { %p1501_p2 = scmp.ne.s32.totalorder %s1499_s17, %s1500_s26  ;;  %s1505_s8 = scalar_lea.hbm %s2103_s0, 128 }
  0x23   : > { %p1506_p0 = scmp.lt.s32.totalorder %s1499_s17, %s2103_s0  ;;  %p1507_p3 = scmp.lt.s32.totalorder %s1505_s8, %s1500_s26 }
  0x24   : > { %p1503_p12 = pnand %p1502_p11, %p1501_p2 }
  0x25   : > { %p1508_p7 = por %p1507_p3, %p1506_p0 }
  0x26   : > { %p1504_p13 = pneg %p1503_p12 }
  0x28   : > { %p1509_p9 = pnand %p1508_p7, %p1504_p13 }
  0x2a   : > { %1512 = shalt.err (!%p1509_p9)
}
  0x2b   : > { %s1612_s6 = smov 128   ;;  %s1613_s11 = smov 8  }
  0x2c   : > { %1382 = dma.hbm_to_vmem [thread:$0]  (!%p1732_p10), %s229_s14, 1024, %s231_s13, %s219_s16, %s1612_s6, %s1612_s6, %s1613_s11  }
  0x2d   : > { %242 = sbr.rel (%p1690_p8) target bundleno = 498 (0x1f2), region = 40  ;;  %s1749_s12 = sand.u32 (!%p1690_p8), 1, %s1598_s19  }
  0x2e   : > { %s2109_s17 = sshll.u32 (!%p1690_p8), %s1749_s12, 6  ;;  %s245_s26 = scalar_lea.sflag (!%p1690_p8), [#allocation5], %s1749_s12 }
  0x2f   : > { %s1755_s27 = scalar_lea.vmem (!%p1690_p8), [#allocation4], %s2109_s17 }
  0x32   : > { %1573 = dma.done.wait (%p1677_p4), %s245_s26, 1024  }
  0x33   : > { %1575 = vsyncadd (%p1677_p4), %s245_s26, 4294966272 }
  0x34   : > { %1577 = dma.done.wait (%p45_p1), [#allocation7], 16  }
  0x35   : > { %1579 = vsyncadd (%p45_p1), [#allocation7], 4294967280 }
  0x36   : > { %1581 = dma.done.wait (%p45_p1), [#allocation8], 16  }
  0x37   : > { %1583 = vsyncadd (%p45_p1), [#allocation8], 4294967280 }
  0x38   : > { %1585 = dma.done.wait (%p45_p1), [#allocation12], 32  }
  0x39   : > { %1587 = vsyncadd (%p45_p1), [#allocation12], 4294967264 }
  0x3a   : > { %274 = sfence }
  0x3b   : > { %vm297_vm0 = vcmask 122880   ;;  %v1614_v0 = vmov 0.0   ;;  %s1777_s24 = sld [smem:[#allocation10 + $0x2]]  ;;  %v1252_v1 = vld [vmem:[%s1755_s27 + $0x1] ss:$2 sm:$0xff]  ;;  %vm324_vm1 = vcmask 130048  }
  0x3c   : > { %298 = vst.msk [vmem:[#allocation2] sm:$0x1] %vm297_vm0, %v1614_v0  ;;  %s1780_s29 = sld [smem:[#allocation9 + $0x2]]  ;;  %v326_v2 = vld [vmem:[%s1755_s27] ss:$2 sm:$0xff]  ;;  %vm313_vm2 = vcmask 57344  }
  0x3d   : > { %300 = vst.msk [vmem:[#allocation2 + $0x20] sm:$0x1] %vm297_vm0, %v1614_v0  ;;  %s1782_s13 = sld [smem:[#allocation9 + $0x6]]  ;;  %v1253_v3 = vld [vmem:[%s1755_s27 + $0x11] ss:$2 sm:$0xff]  ;;  %vm686_vm3 = vcmask 64512  }
  0x3e   : > { %302 = vst.msk [vmem:[#allocation2 + $0x40] sm:$0x1] %vm297_vm0, %v1614_v0  ;;  %s1785_s14 = sld [smem:[#allocation9 + $0xa]]  ;;  %v1254_v4 = vld [vmem:[%s1755_s27 + $0x10] ss:$2 sm:$0xff] }
  0x3f   : > { %304 = vst.msk [vmem:[#allocation2 + $0x60] sm:$0x1] %vm297_vm0, %v1614_v0  ;;  %s1788_s15 = sld [smem:[#allocation9 + $0xe]]  ;;  %v1255_v5 = vld [vmem:[%s1755_s27 + $0x21] ss:$2 sm:$0xff] }
  0x40   : > { %325 = vst.msk [vmem:[#allocation2 + $0x1] sm:$0xff] %vm324_vm1, %v1252_v1  ;;  %s1792_s16 = sld [smem:[#allocation9 + $0x12]]  ;;  %v1256_v6 = vld [vmem:[%s1755_s27 + $0x20] ss:$2 sm:$0xff]  ;;  %v1257_v7 = vld [vmem:[%s1755_s27 + $0x31] ss:$2 sm:$0xff] }
  0x41   : > { %327 = vst.msk [vmem:[#allocation2 + $0x10] sm:$0xff] %vm324_vm1, %v326_v2  ;;  %s1796_s7 = sld [smem:[#allocation9 + $0x16]]  ;;  %v1258_v8 = vld [vmem:[%s1755_s27 + $0x30] ss:$2 sm:$0xff]  ;;  %v351_v11 = vstv %s1777_s24 }
  0x42   : > { %331 = vst.msk [vmem:[#allocation2 + $0x21] sm:$0xff] %vm324_vm1, %v1253_v3  ;;  %s1800_s8 = sld [smem:[#allocation9 + $0x1a]]  ;;  %v364_v9 = vstv %s1780_s29 }
  0x43   : > { %333 = vst.msk [vmem:[#allocation2 + $0x30] sm:$0xff] %vm324_vm1, %v1254_v4  ;;  %s1804_s9 = sld [smem:[#allocation9 + $0x1e]]  ;;  %v381_v10 = vstv %s1782_s13 }
  0x44   : > { %337 = vst.msk [vmem:[#allocation2 + $0x41] sm:$0xff] %vm324_vm1, %v1255_v5  ;;  %s1808_s10 = sld [smem:[#allocation9 + $0x22]]  ;;  %v398_v14 = vstv %s1785_s14 }
  0x45   : > { %339 = vst.msk [vmem:[#allocation2 + $0x50] sm:$0xff] %vm324_vm1, %v1256_v6  ;;  %s1812_s6 = sld [smem:[#allocation9 + $0x26]]  ;;  %v415_v19 = vstv %s1788_s15 }
  0x46   : > { %343 = vst.msk [vmem:[#allocation2 + $0x61] sm:$0xff] %vm324_vm1, %v1257_v7  ;;  %s1816_s11 = sld [smem:[#allocation9 + $0x2a]]  ;;  %v432_v23 = vstv %s1792_s16 }
  0x47   : > { %345 = vst.msk [vmem:[#allocation2 + $0x70] sm:$0xff] %vm324_vm1, %v1258_v8  ;;  %v1820_v12 = vld [vmem:[#allocation2] sm:$0xff]  ;;  %s1825_s26 = sld [smem:[#allocation9 + $0x2e]]  ;;  %v449_v27 = vstv %s1796_s7 }
  0x48   : > { %v1822_v13 = vld [vmem:[#allocation2 + $0x1] sm:$0xff]  ;;  %v365_v15 = vmul.f32 %v364_v9, %v1820_v12  ;;  %v1828_v16 = vld [vmem:[#allocation2 + $0x10] sm:$0xff]  ;;  %s1830_s27 = sld [smem:[#allocation10]]  ;;  %v466_v31 = vstv %s1800_s8  ;;  %316 = vst.msk [vmem:[#allocation3 + $0x30] sm:$0x1] %vm313_vm2, %v1614_v0 }
  0x49   : > { %v382_v17 = vmul.f32 %v381_v10, %v1828_v16  ;;  %v1833_v18 = vld [vmem:[#allocation2 + $0x20] sm:$0xff]  ;;  %s355_s24 = sld [smem:[#allocation9]]  ;;  %v399_v21 = vmul.f32 %v398_v14, %v1822_v13  ;;  %v483_v32 = vstv %s1804_s9  ;;  %314 = vst.msk [vmem:[#allocation3] sm:$0x1] %vm313_vm2, %v1614_v0 }
  0x4a   : > { %v366_v20 = vadd.f32 %v365_v15, %v351_v11  ;;  %s1265_s29 = sld [smem:[#allocation9 + $0x4]]  ;;  %v1837_v22 = vld [vmem:[#allocation2 + $0x30] sm:$0xff]  ;;  %v416_v25 = vmul.f32 %v415_v19, %v1833_v18  ;;  %v1843_v26 = vld [vmem:[#allocation2 + $0x21] sm:$0xff]  ;;  %v500_v41 = vstv %s1808_s10  ;;  %315 = vst.msk [vmem:[#allocation3 + $0x18] sm:$0x1] %vm313_vm2, %v1614_v0 }
  0x4b   : > { %s1269_s13 = sld [smem:[#allocation9 + $0x8]]  ;;  %v433_v29 = vmul.f32 %v432_v23, %v1837_v22  ;;  %v1849_v30 = vld [vmem:[#allocation2 + $0x40] sm:$0xff]  ;;  %v450_v36 = vmul.f32 %v449_v27, %v1843_v26  ;;  %v517_v49 = vstv %s1812_s6  ;;  %317 = vst.msk [vmem:[#allocation3 + $0x48] sm:$0x1] %vm313_vm2, %v1614_v0 }
  0x4c   : > { %v383_v24 = vadd.f32 %v382_v17, %v366_v20  ;;  %s1841_s14 = sld [smem:[#allocation9 + $0xc]]  ;;  %v467_v39 = vmul.f32 %v466_v31, %v1849_v30  ;;  %v1863_v40 = vld [vmem:[#allocation2 + $0x50] sm:$0xff]  ;;  %v1869_v45 = vld [vmem:[#allocation2 + $0x41] sm:$0xff]  ;;  %v534_v60 = vstv %s1816_s11 }
  0x4d   : > { %s1846_s15 = sld [smem:[#allocation9 + $0x10]]  ;;  %v484_v52 = vmul.f32 %v483_v32, %v1863_v40  ;;  %v1880_v53 = vld [vmem:[#allocation2 + $0x60] sm:$0xff]  ;;  %v501_v56 = vmul.f32 %v500_v41, %v1869_v45  ;;  %v551_v1 = vstv %s1825_s26 }
  0x4e   : > { %v400_v28 = vadd.f32 %v399_v21, %v383_v24  ;;  %s1852_s17 = sld [smem:[#allocation9 + $0x14]]  ;;  %v347_v33 = vstv %s1830_s27  ;;  %v1889_v59 = vld [vmem:[#allocation2 + $0x70] sm:$0xff]  ;;  %v518_v63 = vmul.f32 %v517_v49, %v1880_v53  ;;  %v1896_v4 = vld [vmem:[#allocation2 + $0x61] sm:$0xff] }
  0x4f   : > { %v356_v34 = vstv %s355_s24  ;;  %s1856_s16 = sld [smem:[#allocation9 + $0x18]]  ;;  %v535_v8 = vmul.f32 %v534_v60, %v1889_v59  ;;  %v552_v15 = vmul.f32 %v551_v1, %v1896_v4 }
  0x50   : > { %v417_v35 = vadd.f32 %v416_v25, %v400_v28  ;;  %v357_v37 = vmul.f32 %v356_v34, %v1820_v12  ;;  %v373_v38 = vstv %s1265_s29  ;;  %s1860_s7 = sld [smem:[#allocation9 + $0x1c]] }
  0x51   : > { %v374_v42 = vmul.f32 %v373_v38, %v1828_v16  ;;  %v390_v43 = vstv %s1269_s13  ;;  %s1867_s8 = sld [smem:[#allocation9 + $0x20]] }
  0x52   : > { %v434_v44 = vadd.f32 %v433_v29, %v417_v35  ;;  %v358_v46 = vadd.f32 %v357_v37, %v347_v33  ;;  %v391_v47 = vmul.f32 %v390_v43, %v1822_v13  ;;  %v407_v48 = vstv %s1841_s14  ;;  %s1873_s9 = sld [smem:[#allocation9 + $0x24]] }
  0x53   : > { %v424_v50 = vstv %s1846_s15  ;;  %s1877_s27 = sld [smem:[#allocation9 + $0x28]]  ;;  %v408_v55 = vmul.f32 %v407_v48, %v1833_v18 }
  0x54   : > { %v451_v51 = vadd.f32 %v450_v36, %v434_v44  ;;  %v375_v54 = vadd.f32 %v374_v42, %v358_v46  ;;  %s1883_s10 = sld [smem:[#allocation9 + $0x2c]]  ;;  %v441_v57 = vstv %s1852_s17  ;;  %v425_v62 = vmul.f32 %v424_v50, %v1837_v22 }
  0x55   : > { %s1887_s6 = sld [smem:[#allocation10 + $0x3]]  ;;  %v458_v2 = vstv %s1856_s16  ;;  %v442_v6 = vmul.f32 %v441_v57, %v1843_v26 }
  0x56   : > { %v468_v58 = vadd.f32 %v467_v39, %v451_v51  ;;  %v392_v61 = vadd.f32 %v391_v47, %v375_v54  ;;  %s1264_s24 = sld [smem:[#allocation9 + $0x3]]  ;;  %v475_v7 = vstv %s1860_s7  ;;  %v459_v11 = vmul.f32 %v458_v2, %v1849_v30 }
  0x57   : > { %s1268_s29 = sld [smem:[#allocation9 + $0x7]]  ;;  %v492_v14 = vstv %s1867_s8  ;;  %v476_v17 = vmul.f32 %v475_v7, %v1863_v40 }
  0x58   : > { %v485_v3 = vadd.f32 %v484_v52, %v468_v58  ;;  %v409_v5 = vadd.f32 %v408_v55, %v392_v61  ;;  %s1272_s17 = sld [smem:[#allocation9 + $0xb]]  ;;  %v493_v24 = vmul.f32 %v492_v14, %v1869_v45  ;;  %v509_v25 = vstv %s1873_s9 }
  0x59   : > { %s1901_s11 = sld [smem:[#allocation9 + $0xf]]  ;;  %v526_v34 = vstv %s1877_s27  ;;  %v510_v41 = vmul.f32 %v509_v25, %v1880_v53 }
  0x5a   : > { %v502_v9 = vadd.f32 %v501_v56, %v485_v3  ;;  %v426_v10 = vadd.f32 %v425_v62, %v409_v5  ;;  %s1905_s26 = sld [smem:[#allocation9 + $0x13]]  ;;  %v543_v43 = vstv %s1883_s10  ;;  %v527_v48 = vmul.f32 %v526_v34, %v1889_v59 }
  0x5b   : > { %s1909_s13 = sld [smem:[#allocation9 + $0x17]]  ;;  %v353_v21 = vstv %s1887_s6  ;;  %v544_v54 = vmul.f32 %v543_v43, %v1896_v4 }
  0x5c   : > { %v519_v19 = vadd.f32 %v518_v63, %v502_v9  ;;  %v443_v20 = vadd.f32 %v442_v6, %v426_v10  ;;  %v368_v23 = vstv %s1264_s24  ;;  %s1912_s14 = sld [smem:[#allocation9 + $0x1b]] }
  0x5d   : > { %v369_v27 = vmul.f32 %v368_v23, %v1820_v12  ;;  %v385_v28 = vstv %s1268_s29  ;;  %s1917_s15 = sld [smem:[#allocation9 + $0x1f]] }
  0x5e   : > { %v536_v29 = vadd.f32 %v535_v8, %v519_v19  ;;  %v460_v31 = vadd.f32 %v459_v11, %v443_v20  ;;  %v386_v32 = vmul.f32 %v385_v28, %v1828_v16  ;;  %v402_v33 = vstv %s1272_s17  ;;  %s1920_s16 = sld [smem:[#allocation9 + $0x23]] }
  0x5f   : > { %v370_v35 = vadd.f32 %v369_v27, %v353_v21  ;;  %v403_v36 = vmul.f32 %v402_v33, %v1822_v13  ;;  %v419_v37 = vstv %s1901_s11  ;;  %s1925_s7 = sld [smem:[#allocation9 + $0x27]] }
  0x60   : > { %v553_v38 = vadd.f32 %v552_v15, %v536_v29  ;;  %v477_v39 = vadd.f32 %v476_v17, %v460_v31  ;;  %v436_v42 = vstv %s1905_s26  ;;  %s1929_s8 = sld [smem:[#allocation9 + $0x2b]]  ;;  %v420_v46 = vmul.f32 %v419_v37, %v1833_v18 }
  0x61   : > { %v387_v44 = vadd.f32 %v386_v32, %v370_v35  ;;  %s1933_s9 = sld [smem:[#allocation9 + $0x2f]]  ;;  %v453_v49 = vstv %s1909_s13  ;;  %v437_v51 = vmul.f32 %v436_v42, %v1837_v22 }
  0x62   : > { %622 = vxpose.xlu1.b32.start.end [1/1] (short) (narrow) %v553_v38, 16  ;;  %v494_v47 = vadd.f32 %v493_v24, %v477_v39  ;;  %s1937_s27 = sld [smem:[#allocation10 + $0x1]]  ;;  %v470_v55 = vstv %s1912_s14  ;;  %v454_v57 = vmul.f32 %v453_v49, %v1843_v26 }
  0x63   : > { %v404_v50 = vadd.f32 %v403_v36, %v387_v44  ;;  %s1262_s6 = sld [smem:[#allocation9 + $0x1]]  ;;  %v487_v60 = vstv %s1917_s15  ;;  %v471_v62 = vmul.f32 %v470_v55, %v1849_v30 }
  0x64   : > { %v511_v52 = vadd.f32 %v510_v41, %v494_v47  ;;  %s1266_s10 = sld [smem:[#allocation9 + $0x5]]  ;;  %v504_v1 = vstv %s1920_s16  ;;  %v488_v3 = vmul.f32 %v487_v60, %v1863_v40 }
  0x65   : > { %v421_v56 = vadd.f32 %v420_v46, %v404_v50  ;;  %s1270_s24 = sld [smem:[#allocation9 + $0x9]]  ;;  %v521_v7 = vstv %s1925_s7  ;;  %v505_v11 = vmul.f32 %v504_v1, %v1869_v45 }
  0x66   : > { %v528_v58 = vadd.f32 %v527_v48, %v511_v52  ;;  %s1944_s29 = sld [smem:[#allocation9 + $0xd]]  ;;  %v538_v17 = vstv %s1929_s8  ;;  %v522_v24 = vmul.f32 %v521_v7, %v1880_v53 }
  0x67   : > { %v438_v61 = vadd.f32 %v437_v51, %v421_v56  ;;  %s1947_s17 = sld [smem:[#allocation9 + $0x11]]  ;;  %v555_v25 = vstv %s1933_s9  ;;  %v539_v29 = vmul.f32 %v538_v17, %v1889_v59 }
  0x68   : > { %v545_v63 = vadd.f32 %v544_v54, %v528_v58  ;;  %s1950_s11 = sld [smem:[#allocation9 + $0x15]]  ;;  %v349_v5 = vstv %s1937_s27  ;;  %v556_v34 = vmul.f32 %v555_v25, %v1896_v4 }
  0x69   : > { %v455_v2 = vadd.f32 %v454_v57, %v438_v61  ;;  %v360_v6 = vstv %s1262_s6  ;;  %s1954_s26 = sld [smem:[#allocation9 + $0x19]] }
  0x6a   : > { %558 = vxpose.xlu0.b32.start.end [1/1] (short) (narrow) %v545_v63, 16  ;;  %v361_v8 = vmul.f32 %v360_v6, %v1820_v12  ;;  %v377_v9 = vstv %s1266_s10  ;;  %s1960_s13 = sld [smem:[#allocation9 + $0x1d]] }
  0x6b   : > { %v472_v10 = vadd.f32 %v471_v62, %v455_v2  ;;  %v378_v14 = vmul.f32 %v377_v9, %v1828_v16  ;;  %v394_v15 = vstv %s1270_s24  ;;  %s1294_s14 = sld [smem:[#allocation9 + $0x21]] }
  0x6c   : > { %v362_v19 = vadd.f32 %v361_v8, %v349_v5  ;;  %v395_v20 = vmul.f32 %v394_v15, %v1822_v13  ;;  %v411_v21 = vstv %s1944_s29  ;;  %s1298_s15 = sld [smem:[#allocation9 + $0x25]] }
  0x6d   : > { %v489_v23 = vadd.f32 %v488_v3, %v472_v10  ;;  %v428_v12 = vstv %s1947_s17  ;;  %v412_v16 = vmul.f32 %v411_v21, %v1833_v18  ;;  %s1302_s16 = sld [smem:[#allocation9 + $0x29]] }
  0x6e   : > { %v379_v27 = vadd.f32 %v378_v14, %v362_v19  ;;  %v445_v31 = vstv %s1950_s11  ;;  %v429_v13 = vmul.f32 %v428_v12, %v1837_v22  ;;  %s1306_s7 = sld [smem:[#allocation9 + $0x2d]] }
  0x6f   : > { %v506_v28 = vadd.f32 %v505_v11, %v489_v23  ;;  %v462_v35 = vstv %s1954_s26  ;;  %v446_v37 = vmul.f32 %v445_v31, %v1843_v26  ;;  %s1325_s8 = sld [smem:[#allocation11 + $0xc]] }
  0x70   : > { %v396_v32 = vadd.f32 %v395_v20, %v379_v27  ;;  %v479_v39 = vstv %s1960_s13  ;;  %v463_v41 = vmul.f32 %v462_v35, %v1849_v30  ;;  %s1327_s9 = sld [smem:[#allocation11 + $0xe]] }
  0x71   : > { %v523_v33 = vadd.f32 %v522_v24, %v506_v28  ;;  %v496_v43 = vstv %s1294_s14  ;;  %v480_v46 = vmul.f32 %v479_v39, %v1863_v40  ;;  %s1323_s27 = sld [smem:[#allocation13 + $0x4]] }
  0x72   : > { %v413_v36 = vadd.f32 %v412_v16, %v396_v32  ;;  %v513_v22 = vstv %s1298_s15  ;;  %v497_v48 = vmul.f32 %v496_v43, %v1869_v45  ;;  %s1329_s6 = sld [smem:[#allocation11 + $0x10]] }
  0x73   : > { %v540_v38 = vadd.f32 %v539_v29, %v523_v33  ;;  %v530_v49 = vstv %s1302_s16  ;;  %v514_v26 = vmul.f32 %v513_v22, %v1880_v53  ;;  %s1989_s10 = sld [smem:[#allocation13]] }
  0x74   : > { %v430_v18 = vadd.f32 %v429_v13, %v413_v36  ;;  %v547_v51 = vstv %s1306_s7  ;;  %v531_v54 = vmul.f32 %v530_v49, %v1889_v59  ;;  %s700_s24 = sld [smem:[#allocation11]] }
  0x75   : > { %v557_v42 = vadd.f32 %v556_v34, %v540_v38  ;;  %v548_v30 = vmul.f32 %v547_v51, %v1896_v4  ;;  %v897_v59 = vstv %s1325_s8  ;;  %s1991_s29 = sld [smem:[#allocation11 + $0x2]] }
  0x76   : > { %v447_v44 = vadd.f32 %v446_v37, %v430_v18  ;;  %s1993_s17 = sld [smem:[#allocation11 + $0x1]]  ;;  %v907_v61 = vstv %s1327_s9 }
  0x77   : > { %654 = vxpose.xlu1.b32.start.end [1/1] (short) (narrow) %v557_v42, 16  ;;  %v891_v0 = vstv %s1323_s27  ;;  %s1313_s11 = sld [smem:[#allocation11 + $0x4]] }
  0x78   : > { %v464_v47 = vadd.f32 %v463_v41, %v447_v44  ;;  %v917_v1 = vstv %s1329_s6  ;;  %s1309_s26 = sld [smem:[#allocation13 + $0x1]] }
  0x79   : > { %s1312_s13 = sld [smem:[#allocation11 + $0x3]]  ;;  %v696_v10 = vstv %s1989_s10 }
  0x7a   : > { %v481_v50 = vadd.f32 %v480_v46, %v464_v47  ;;  %v701_v8 = vstv %s700_s24  ;;  %s1314_s14 = sld [smem:[#allocation11 + $0x5]] }
  0x7b   : > { %v711_v15 = vstv %s1991_s29  ;;  %s2011_s15 = sld [smem:[#allocation11 + $0xd]] }
  0x7c   : > { %v498_v52 = vadd.f32 %v497_v48, %v481_v50  ;;  %v705_v17 = vstv %s1993_s17  ;;  %s2013_s16 = sld [smem:[#allocation13 + $0x3]] }
  0x7d   : > { %v721_v21 = vstv %s1313_s11  ;;  %s1318_s7 = sld [smem:[#allocation11 + $0x7]] }
  0x7e   : > { %v515_v55 = vadd.f32 %v514_v26, %v498_v52  ;;  %v698_v25 = vstv %s1309_s26  ;;  %s2015_s8 = sld [smem:[#allocation11 + $0x9]] }
  0x7f   : > { %v715_v29 = vstv %s1312_s13  ;;  %s2017_s9 = sld [smem:[#allocation13 + $0x2]] }
  0x80   : > { %v532_v56 = vadd.f32 %v531_v54, %v515_v55  ;;  %v725_v34 = vstv %s1314_s14  ;;  %s1317_s27 = sld [smem:[#allocation11 + $0x6]] }
  0x81   : > { %s1334_s6 = sld [smem:[#allocation11 + $0x13]]  ;;  %v901_v43 = vstv %s2011_s15 }
  0x82   : > { %v549_v57 = vadd.f32 %v548_v30, %v532_v56  ;;  %s2019_s10 = sld [smem:[#allocation11 + $0x8]]  ;;  %v795_v44 = vstv %s2013_s16 }
  0x83   : > { %s2022_s24 = sld [smem:[#allocation11 + $0xb]]  ;;  %v803_v39 = vstv %s1318_s7 }
  0x84   : > { %590 = vxpose.xlu0.b32.start.end [1/1] (short) (narrow) %v549_v57, 16  ;;  %s2024_s29 = sld [smem:[#allocation11 + $0xa]]  ;;  %v813_v47 = vstv %s2015_s8 }
  0x85   : > { %s2026_s17 = sld [smem:[#allocation13 + $0x5]]  ;;  %v793_v48 = vstv %s2017_s9 }
  0x86   : > { %s2028_s11 = sld [smem:[#allocation13 + $0x7]]  ;;  %v799_v18 = vstv %s1317_s27  ;;  %s2115_s27 = sshll.u32 %s1749_s12, 6 }
  0x87   : > { %s2030_s26 = sld [smem:[#allocation11 + $0xf]]  ;;  %v999_v42 = vstv %s1334_s6  ;;  %s296_s6 = scalar_lea.vmem [#allocation14], %s2115_s27 }
  0x88   : > { %s2032_s13 = sld [smem:[#allocation11 + $0x15]]  ;;  %v809_v49 = vstv %s2019_s10  ;;  %s1345_s10 = sshll.u32 %s1668_s22, 6 }
  0x89   : > { %s2039_s14 = sld [smem:[#allocation11 + $0x12]]  ;;  %v823_v52 = vstv %s2022_s24  ;;  %s1095_s22 = scalar_lea.sflag [#allocation6], %s1749_s12 }
  0x8a   : > { %s2041_s7 = sld [smem:[#allocation11 + $0x17]]  ;;  %v819_v54 = vstv %s2024_s29 }
  0x8b   : > { %s2046_s15 = sld [smem:[#allocation11 + $0x11]] }
  0x8c   : > { %s2050_s16 = sld [smem:[#allocation13 + $0x6]] }
  0x8d   : > { %s1335_s8 = sld [smem:[#allocation11 + $0x14]] }
  0x8e   : > { %s1337_s9 = sld [smem:[#allocation11 + $0x16]] }
 0x106   : > { %v638_v40 = vpop.trf.xlu1 }
 0x107   : > { %691 = vst.msk [vmem:[#allocation3 + $0x31] sm:$0xff] %vm686_vm3, %v638_v40 }
 0x10e   : > { %v574_v45 = vpop.trf.xlu0  ;;  %v639_v53 = vpop.trf.xlu1 }
 0x10f   : > { %687 = vst.msk [vmem:[#allocation3 + $0x1] sm:$0xff] %vm686_vm3, %v574_v45 }
 0x110   : > { %692 = vst.msk [vmem:[#allocation3 + $0x39] sm:$0xff] %vm686_vm3, %v639_v53  ;;  %v991_v53 = vstv %s2028_s11  ;;  %s1107_s11 = sshll.u32 %s296_s6, 4  ;;  %s1108_s11 = int_to_ptr.vmem [resolvable:$true] %s1107_s11 }
 0x116   : > { %v575_v4 = vpop.trf.xlu0 }
 0x117   : > { %688 = vst.msk [vmem:[#allocation3 + $0x9] sm:$0xff] %vm686_vm3, %v575_v4  ;;  %v1996_v58 = vld [vmem:[#allocation3 + $0x30] ss:$2 sm:$0xff]  ;;  %v1998_v60 = vld [vmem:[#allocation3 + $0x31] ss:$2 sm:$0xff] }
 0x118   : > { %v898_v62 = vmul.f32 %v897_v59, %v1996_v58  ;;  %v2001_v63 = vld [vmem:[#allocation3 + $0x32] ss:$2 sm:$0xff]  ;;  %v908_v3 = vmul.f32 %v907_v61, %v1998_v60  ;;  %v902_v30 = vmul.f32 %v901_v43, %v1996_v58  ;;  %v893_v59 = vstv %s2026_s17  ;;  %s1106_s17 = scalar_lea.hbm %s2108_s5, %s1345_s10 }
 0x119   : > { %v918_v7 = vmul.f32 %v917_v1, %v2001_v63  ;;  %v911_v58 = vstv %s2030_s26  ;;  %s1109_s26 = sshll.u32 %s1106_s17, 4  ;;  %s1110_s26 = int_to_ptr.hbm [resolvable:$true] %s1109_s26 }
 0x11a   : > { %v899_v2 = vadd.f32 %v898_v62, %v891_v0 }
 0x11b   : > { %v670_v5 = vpop.trf.xlu1 }
 0x11c   : > { %693 = vst.msk [vmem:[#allocation3 + $0x49] sm:$0xff] %vm686_vm3, %v670_v5  ;;  %v909_v6 = vadd.f32 %v908_v3, %v899_v2  ;;  %v1009_v2 = vstv %s2032_s13  ;;  %s1542_s13 = sshra.s32 %s1110_s26, 4  ;;  %s1543_s13 = int_to_ptr.hbm [resolvable:$true] %s1542_s13 }
 0x11d   : > { %p1549_p9 = scmp.lt.s32.totalorder %s1543_s13, %s2108_s5 }
 0x11e   : > { %v919_v9 = vadd.f32 %v918_v7, %v909_v6  ;;  %v699_v11 = vld [vmem:[#allocation3] ss:$2 sm:$0xff]  ;;  %v709_v14 = vld [vmem:[#allocation3 + $0x1] ss:$2 sm:$0xff]  ;;  %v903_v7 = vadd.f32 %v902_v30, %v893_v59 }
 0x11f   : > { %v702_v19 = vmul.f32 %v701_v8, %v699_v11  ;;  %v719_v20 = vld [vmem:[#allocation3 + $0x2] ss:$2 sm:$0xff]  ;;  %v712_v24 = vmul.f32 %v711_v15, %v709_v14  ;;  %v706_v12 = vmul.f32 %v705_v17, %v699_v11  ;;  %v716_v13 = vmul.f32 %v715_v29, %v709_v14 }
 0x120   : > { %924 = vxpose.xlu1.b32.start.end [1/1] (short) (narrow) %v919_v9, 8  ;;  %v722_v28 = vmul.f32 %v721_v21, %v719_v20  ;;  %v726_v36 = vmul.f32 %v725_v34, %v719_v20  ;;  %v995_v8 = vstv %s2039_s14  ;;  %v1019_v14 = vstv %s2041_s7  ;;  %s1544_s14 = scalar_lea.hbm %s1543_s13, 64 }
 0x121   : > { %v703_v23 = vadd.f32 %v702_v19, %v696_v10  ;;  %v707_v32 = vadd.f32 %v706_v12, %v698_v25  ;;  %v912_v10 = vmul.f32 %v911_v58, %v1998_v60  ;;  %v921_v15 = vstv %s2046_s15  ;;  %p1545_p1 = scmp.ne.s32.totalorder %s1543_s13, %s1544_s14 }
 0x122   : > { %v989_v21 = vstv %s2050_s16  ;;  %v1005_v12 = vstv %s1335_s8  ;;  %v1015_v60 = vstv %s1337_s9  ;;  %s1548_s16 = scalar_lea.hbm %s2108_s5, 128 }
 0x123   : > { %v671_v27 = vpop.trf.xlu1  ;;  %v713_v16 = vadd.f32 %v712_v24, %v703_v23  ;;  %v717_v35 = vadd.f32 %v716_v13, %v707_v32  ;;  %v913_v19 = vadd.f32 %v912_v10, %v903_v7  ;;  %v922_v24 = vmul.f32 %v921_v15, %v2001_v63  ;;  %p1546_p4 = pnand %p1545_p1, %p1722_p5  ;;  %p1550_p10 = scmp.lt.s32.totalorder %s1548_s16, %s1544_s14 }
 0x124   : > { %694 = vst.msk [vmem:[#allocation3 + $0x51] sm:$0xff] %vm686_vm3, %v671_v27 }
 0x125   : > { %v723_v31 = vadd.f32 %v722_v28, %v713_v16  ;;  %v727_v37 = vadd.f32 %v726_v36, %v717_v35  ;;  %v923_v27 = vadd.f32 %v922_v24, %v913_v19  ;;  %p1547_p8 = pneg %p1546_p4  ;;  %p1551_p2 = por %p1550_p10, %p1549_p9 }
 0x127   : > { %728 = vxpose.xlu2.b32.start.end [1/1] (short) (narrow) %v723_v31, 8  ;;  %p1552_p11 = pnand %p1551_p2, %p1547_p8 }
 0x128   : > { %v606_v33 = vpop.trf.xlu0 }
 0x129   : > { %689 = vst.msk [vmem:[#allocation3 + $0x19] sm:$0xff] %vm686_vm3, %v606_v33 }
 0x12b   : > { %v993_v41 = vld [vmem:[#allocation3 + $0x48] ss:$2 sm:$0xff]  ;;  %v1003_v1 = vld [vmem:[#allocation3 + $0x49] ss:$2 sm:$0xff] }
 0x12c   : > { %v1000_v55 = vmul.f32 %v999_v42, %v993_v41  ;;  %v1010_v9 = vmul.f32 %v1009_v2, %v1003_v1  ;;  %v1013_v11 = vld [vmem:[#allocation3 + $0x4a] ss:$2 sm:$0xff]  ;;  %v996_v20 = vmul.f32 %v995_v8, %v993_v41  ;;  %v1006_v28 = vmul.f32 %v1005_v12, %v1003_v1 }
 0x12d   : > { %v1020_v23 = vmul.f32 %v1019_v14, %v1013_v11  ;;  %v1016_v31 = vmul.f32 %v1015_v60, %v1013_v11 }
 0x12e   : > { %v1001_v6 = vadd.f32 %v1000_v55, %v991_v53  ;;  %v997_v16 = vadd.f32 %v996_v20, %v989_v21 }
 0x12f   : > { %760 = vxpose.xlu2.b32.start.end [1/1] (short) (narrow) %v727_v37, 8 }
 0x130   : > { %v607_v38 = vpop.trf.xlu0  ;;  %v1011_v17 = vadd.f32 %v1010_v9, %v1001_v6  ;;  %v1007_v29 = vadd.f32 %v1006_v28, %v997_v16 }
 0x131   : > { %690 = vst.msk [vmem:[#allocation3 + $0x21] sm:$0xff] %vm686_vm3, %v607_v38 }
 0x132   : > { %v1021_v25 = vadd.f32 %v1020_v23, %v1011_v17  ;;  %v1017_v32 = vadd.f32 %v1016_v31, %v1007_v29 }
 0x138   : > { %v797_v46 = vld [vmem:[#allocation3 + $0x18] ss:$2 sm:$0xff]  ;;  %v807_v22 = vld [vmem:[#allocation3 + $0x19] ss:$2 sm:$0xff] }
 0x139   : > { %v804_v50 = vmul.f32 %v803_v39, %v797_v46  ;;  %v800_v26 = vmul.f32 %v799_v18, %v797_v46  ;;  %v817_v51 = vld [vmem:[#allocation3 + $0x1a] ss:$2 sm:$0xff]  ;;  %v814_v57 = vmul.f32 %v813_v47, %v807_v22  ;;  %v810_v45 = vmul.f32 %v809_v49, %v807_v22 }
 0x13a   : > { %v824_v0 = vmul.f32 %v823_v52, %v817_v51  ;;  %v820_v62 = vmul.f32 %v819_v54, %v817_v51 }
 0x13b   : > { %v805_v56 = vadd.f32 %v804_v50, %v795_v44  ;;  %v801_v40 = vadd.f32 %v800_v26, %v793_v48 }
 0x13d   : > { %v815_v4 = vadd.f32 %v814_v57, %v805_v56  ;;  %v811_v61 = vadd.f32 %v810_v45, %v801_v40 }
 0x13f   : > { %v825_v3 = vadd.f32 %v824_v0, %v815_v4  ;;  %v821_v5 = vadd.f32 %v820_v62, %v811_v61 }
 0x141   : > { %858 = vxpose.xlu0.b32.start.end [1/1] (short) (narrow) %v825_v3, 8  ;;  %826 = vxpose.xlu2.b32.start.end [1/1] (short) (narrow) %v821_v5, 8 }
 0x149   : > { %1054 = vxpose.xlu0.b32.start.end [1/1] (short) (narrow) %v1021_v25, 8  ;;  %956 = vxpose.xlu2.b32.start.end [1/1] (short) (narrow) %v923_v27, 8 }
 0x151   : > { %1022 = vxpose.xlu2.b32.start.end [1/1] (short) (narrow) %v1017_v32, 8 }
 0x1c0   : > { %v744_v13 = vpop.trf.xlu2 }
 0x1c1   : > { %1086 = vst.msk [vmem:[%s296_s6] sm:$0xff] %vm686_vm3, %v744_v13 }
 0x1c4   : > { %v940_v33 = vpop.trf.xlu1 }
 0x1c5   : > { %1088 = vst.msk [vmem:[%s296_s6 + $0x10] sm:$0xff] %vm686_vm3, %v940_v33 }
 0x1c8   : > { %v776_v63 = vpop.trf.xlu2 }
 0x1c9   : > { %1090 = vst.msk [vmem:[%s296_s6 + $0x20] sm:$0xff] %vm686_vm3, %v776_v63 }
 0x1da   : > { %v842_v34 = vpop.trf.xlu2 }
 0x1db   : > { %1087 = vst.msk [vmem:[%s296_s6 + $0x8] sm:$0xff] %vm686_vm3, %v842_v34 }
 0x1e2   : > { %v972_v35 = vpop.trf.xlu2 }
 0x1e3   : > { %1092 = vst.msk [vmem:[%s296_s6 + $0x30] sm:$0xff] %vm686_vm3, %v972_v35 }
 0x1e5   : > { %v874_v36 = vpop.trf.xlu0 }
 0x1e6   : > { %1091 = vst.msk [vmem:[%s296_s6 + $0x28] sm:$0xff] %vm686_vm3, %v874_v36 }
 0x1ea   : > { %v1038_v37 = vpop.trf.xlu2 }
 0x1eb   : > { %1089 = vst.msk [vmem:[%s296_s6 + $0x18] sm:$0xff] %vm686_vm3, %v1038_v37 }
 0x1ed   : > { %v1070_v38 = vpop.trf.xlu0 }
 0x1ee   : > { %1093 = vst.msk [vmem:[%s296_s6 + $0x38] sm:$0xff] %vm686_vm3, %v1070_v38 }
 0x1ef   : > { %1555 = shalt.err (!%p1552_p11)
}
 0x1f0   : > { %s1615_s12 = smov 128   ;;  %s1616_s27 = smov 8  }
 0x1f1   : > { %1364 = dma.vmem_to_hbm [thread:$0]  (%p1722_p5), %s1108_s11, 1024, %s1110_s26, %s1095_s22, %s1615_s12, %s1615_s12, %s1616_s27  }
 0x1f2 PF: > { %s1124_s6 = sand.u32 1, %s1594_s18   ;;  %p2116_p12 = scmp.ge.s32.totalorder %s1606_s21, 2 }
 0x1f3   : > { %s1125_s10 = scalar_lea.sflag [#allocation6], %s1124_s6 }
 0x1f4   : > { %p1384_p13 = pnand %p2116_p12, %p1682_p6 }
 0x1f6   : > { %p1385_p0 = pneg %p1384_p13 }
 0x1f8   : > { %1589 = dma.done.wait (%p1385_p0), %s1125_s10, 1024  }
 0x1f9   : > { %1591 = vsyncadd (%p1385_p0), %s1125_s10, 4294966272  ;;  %p21_p3 = scmp.ge.s32.totalorder %s1709_s23, 4   ;;  %s2117_s18 = smov %s1598_s19 }
 0x1fa   : > { %s2118_s19 = smov %s1602_s20  ;;  %s2119_s20 = smov %s1718_s28 }
 0x1fb   : > { %s2120_s21 = smov %s1709_s23  ;;  %23 = sbr.rel (!%p21_p3) target bundleno = 8 (0x8), region = 128 }
 0x200   :  { %1131 = vsyncpa [#allocation5], 1 }
 0x201   :  { %1133 = vsyncpa [#allocation5 + $0x1], 1 }
 0x202   :  { %1134 = vsyncpa [#allocation6], 1 }
 0x203   :  { %1136 = vsyncpa [#allocation6 + $0x1], 1 }
 0x204   :  { %1137 = vsyncpa [#allocation7], 1 }
 0x205   :  { %1139 = vsyncpa [#allocation7 + $0x1], 1 }
 0x206   :  { %1140 = vsyncpa [#allocation8], 1 }
 0x207   :  { %1142 = vsyncpa [#allocation8 + $0x1], 1 }
 0x208   :  { %1143 = vsyncpa [#allocation12], 1 }

</bundles_post_ra>
